<compile_context>
chip_gen: v6e
topology: v6e:2x2x1
jax: 0.10.0
libtpu: 0.0.40
codegen_flags: <defaults>
</compile_context>

<pallas_src>
import numpy as np
import jax
import jax.numpy as jnp
from jax.experimental import pallas as pl
from jax.experimental.pallas import tpu as pltpu

_PAD_OFF = 8                 # sublane-aligned interior offset in pad scratches
_DOT_DTYPE = jnp.bfloat16    # MXU operand dtype (accumulation stays f32)


# ------------------------------------------------------------------
# In-kernel building blocks
# ------------------------------------------------------------------
def _store_padded(pad_ref, x, *, pad):
    """Store activation into the padded scratch; zero ONLY the halo rows.

    Only rows [_PAD_OFF-pad, _PAD_OFF) and [_PAD_OFF+L, _PAD_OFF+L+pad) are
    ever read as padding, so only those are zeroed (cheap masked stores).
    """
    B, L, C = x.shape
    halo = jnp.zeros((B, pad, C), pad_ref.dtype)
    pad_ref[:, _PAD_OFF - pad:_PAD_OFF, :] = halo
    pad_ref[:, _PAD_OFF + L:_PAD_OFF + L + pad, :] = halo
    pad_ref[:, _PAD_OFF:_PAD_OFF + L, :] = x.astype(pad_ref.dtype)


def _conv1d_relu(pad_ref, w_ref, b_ref, *, K, pad, L):
    """Conv1d (PyTorch cross-correlation) + bias + ReLU, channels-last.

    Accumulated per-tap dots:  y = relu(b + sum_k  x[:, l+k-pad, :] @ w[k]).
    w_ref: (K, Cin, Cout) bf16, b_ref: (1, Cout) f32.  Returns (B, L, Cout) f32.
    """
    B = pad_ref.shape[0]
    Cout = w_ref.shape[2]
    base = _PAD_OFF - pad
    acc = jnp.zeros((B * L, Cout), jnp.float32)
    for k in range(K):
        xs = pad_ref[:, base + k: base + k + L, :]
        xs = xs.reshape(B * L, -1).astype(_DOT_DTYPE)
        acc = acc + jnp.dot(xs, w_ref[k], preferred_element_type=jnp.float32)
    return jnp.maximum(acc + b_ref[...], 0.0).reshape(B, L, Cout)


def _conv1d_relu_avgpool2(pad_ref, w_ref, b_ref, *, K, pad, L):
    """Conv1d + bias + ReLU + AvgPool1d(2) fused.

    The even- and odd-position conv outputs are computed directly with
    stride-2 tap reads and averaged in registers — no staging buffer, no
    post-hoc strided gather of the conv output.  Returns (B, L//2, Cout) f32.
    """
    B = pad_ref.shape[0]
    Cout = w_ref.shape[2]
    Lh = L // 2
    base = _PAD_OFF - pad
    halves = []
    for parity in (0, 1):
        acc = jnp.zeros((B * Lh, Cout), jnp.float32)
        for k in range(K):
            xs = pad_ref[:, pl.ds(base + k + parity, Lh, stride=2), :]
            xs = xs.reshape(B * Lh, -1).astype(_DOT_DTYPE)
            acc = acc + jnp.dot(xs, w_ref[k], preferred_element_type=jnp.float32)
        halves.append(jnp.maximum(acc + b_ref[...], 0.0))      # ReLU before pool
    return (0.5 * (halves[0] + halves[1])).reshape(B, Lh, Cout)


def fused_cnn_kernel(x_ref, w1_ref, b1_ref, w2_ref, b2_ref, w3_ref, b3_ref,
                     w4_ref, b4_ref, wfc_ref, bfc_ref, o_ref,
                     pad1_ref, pad2_ref, pad3_ref, pad4_ref):
    B, L, _ = x_ref.shape
    Lh = L // 2

    # conv1 (2->16, k=5, p=2) + ReLU
    _store_padded(pad1_ref, x_ref[...], pad=2)
    y = _conv1d_relu(pad1_ref, w1_ref, b1_ref, K=5, pad=2, L=L)

    # conv2 (16->32, k=3, p=1) + ReLU + AvgPool1d(2)  (pool fused into taps)
    _store_padded(pad2_ref, y, pad=1)
    y = _conv1d_relu_avgpool2(pad2_ref, w2_ref, b2_ref, K=3, pad=1, L=L)

    # conv3 (32->64, k=3, p=1) + ReLU ; conv4 (64->64, k=3, p=1) + ReLU
    _store_padded(pad3_ref, y, pad=1)
    y = _conv1d_relu(pad3_ref, w3_ref, b3_ref, K=3, pad=1, L=Lh)
    _store_padded(pad4_ref, y, pad=1)
    y = _conv1d_relu(pad4_ref, w4_ref, b4_ref, K=3, pad=1, L=Lh)

    # AdaptiveAvgPool1d(1) + Flatten + Linear(64, 2).
    # TODO(synk): Dropout(0.3) is identity in eval mode; a training path would
    # need pltpu.prng_seed / pltpu.prng_random_bits masking.
    pooled = jnp.mean(y, axis=1)                                  # (B, 64) f32
    o_ref[...] = (jnp.dot(pooled, wfc_ref[...],
                          preferred_element_type=jnp.float32) + bfc_ref[...])


# ------------------------------------------------------------------
# Wrapper (single pallas_call for the whole network)
# ------------------------------------------------------------------
def _default_batch_tile(B):
    """>=2 grid steps at large B (v7x megacore) and capped per-core scratch
    (~12 KiB f32 scratch + temps per batch element -> bt<=512 stays well under
    the 48 MiB scoped-VMEM limit on v7x's 64 MiB cores)."""
    if B < 16:
        return B
    bt = min(512, B // 2)
    bt -= bt % 8
    while bt >= 8 and B % bt:
        bt -= 8
    return bt if bt >= 8 else B


def fused_cnn(x_blc, kp, *, batch_tile=None, vmem_limit_bytes=48 * 1024 * 1024):
    """x_blc: (B, L, 2) channels-last f32; kp: kernel-layout params (bf16 conv
    weights).  Returns (B, 2) f32 logits."""
    B, L, Cin = x_blc.shape
    assert L % 2 == 0, "AvgPool1d(2) path assumes even length"
    bt = _default_batch_tile(B) if batch_tile is None else batch_tile
    assert B % bt == 0
    # (8,128) rule: the (bt, 2) out-block's second-to-last dim must be a
    # multiple of 8 unless it equals the full batch.
    assert bt == B or bt % 8 == 0, "batch_tile < B must be a multiple of 8"
    Lh = L // 2

    weights = (kp["w1"], kp["b1"], kp["w2"], kp["b2"], kp["w3"], kp["b3"],
               kp["w4"], kp["b4"], kp["wfc"], kp["bfc"])

    def conv_flops(rows, w):                       # w: (K, Cin, Cout)
        return 2 * rows * w.shape[0] * w.shape[1] * w.shape[2]

    flops = int(conv_flops(B * L, kp["w1"]) + conv_flops(B * L, kp["w2"])
                + conv_flops(B * Lh, kp["w3"]) + conv_flops(B * Lh, kp["w4"])
                + 2 * B * kp["wfc"].shape[0] * kp["wfc"].shape[1])
    bytes_accessed = int(
        x_blc.size * x_blc.dtype.itemsize
        + sum(int(np.prod(w.shape)) * w.dtype.itemsize for w in weights)
        + B * 2 * 4)

    w_specs = [pl.BlockSpec(w.shape, lambda i, n=w.ndim: (0,) * n)
               for w in weights]

    return pl.pallas_call(
        fused_cnn_kernel,
        out_shape=jax.ShapeDtypeStruct((B, 2), jnp.float32),
        grid=(B // bt,),
        in_specs=[pl.BlockSpec((bt, L, Cin), lambda i: (i, 0, 0))] + w_specs,
        out_specs=pl.BlockSpec((bt, 2), lambda i: (i, 0)),
        scratch_shapes=[
            pltpu.VMEM((bt, L + 2 * _PAD_OFF, Cin), jnp.float32),   # conv1 pad
            pltpu.VMEM((bt, L + 2 * _PAD_OFF, 16), jnp.float32),    # conv2 pad
            pltpu.VMEM((bt, Lh + 2 * _PAD_OFF, 32), jnp.float32),   # conv3 pad
            pltpu.VMEM((bt, Lh + 2 * _PAD_OFF, 64), jnp.float32),   # conv4 pad
        ],
        compiler_params=pltpu.CompilerParams(
            dimension_semantics=("parallel",),
            vmem_limit_bytes=vmem_limit_bytes),
        cost_estimate=pl.CostEstimate(flops=flops, transcendentals=0,
                                      bytes_accessed=bytes_accessed),
    )(x_blc, *weights)


# ------------------------------------------------------------------
# Parameter preparation (PyTorch layout -> kernel layout), done ONCE outside jit
# ------------------------------------------------------------------
def prepare_params(p):
    def conv_w(w):  # (Cout, Cin, K) -> (K, Cin, Cout), bf16 MXU operand
        return jnp.transpose(w, (2, 1, 0)).astype(jnp.bfloat16)
    f32 = jnp.float32
    return dict(
        w1=conv_w(p["w1"]), b1=p["b1"].astype(f32)[None, :],
        w2=conv_w(p["w2"]), b2=p["b2"].astype(f32)[None, :],
        w3=conv_w(p["w3"]), b3=p["b3"].astype(f32)[None, :],
        w4=conv_w(p["w4"]), b4=p["b4"].astype(f32)[None, :],
        wfc=p["wfc"].T.astype(f32), bfc=p["bfc"].astype(f32)[None, :],
    )


@jax.jit
def cnn_forward_nlc(x_nlc, kparams):
    """Preferred entry: x already channels-last (B, L, 2) — no XLA transpose."""
    return fused_cnn(x_nlc, kparams)


@jax.jit
def cnn_forward(x_ncl, kparams):
    """PyTorch-layout entry: x_ncl (B, 2, L) float32 (NCL). Returns (B, 2).

    The NCL->NLC transpose below is the only op outside the fused kernel;
    pipelines that can supply channels-last data should use cnn_forward_nlc.
    """
    return fused_cnn(jnp.transpose(x_ncl, (0, 2, 1)), kparams)


# ------------------------------------------------------------------
# Pure-JAX f32 reference (matches PyTorch semantics) for sanity checking
# ------------------------------------------------------------------
def ref_forward(x_ncl, params):
    def conv(x, w, b, pad):
        y = jax.lax.conv_general_dilated(
            x, w, window_strides=(1,), padding=[(pad, pad)],
            dimension_numbers=("NCH", "OIH", "NCH"))
        return jax.nn.relu(y + b[None, :, None])

    y = conv(x_ncl, params["w1"], params["b1"], 2)
    y = conv(y, params["w2"], params["b2"], 1)
    B, C, L = y.shape
    y = y.reshape(B, C, L // 2, 2).mean(-1)            # AvgPool1d(2)
    y = conv(y, params["w3"], params["b3"], 1)
    y = conv(y, params["w4"], params["b4"], 1)
    y = y.mean(-1)                                     # AdaptiveAvgPool1d(1)+Flatten
    return y @ params["wfc"].T + params["bfc"]


def init_params(key):
    ks = jax.random.split(key, 10)

    def conv_p(kw, kb, cout, cin, k):
        bound = 1.0 / np.sqrt(cin * k)
        w = jax.random.uniform(kw, (cout, cin, k), jnp.float32, -bound, bound)
        b = jax.random.uniform(kb, (cout,), jnp.float32, -bound, bound)
        return w, b

    w1, b1 = conv_p(ks[0], ks[1], 16, 2, 5)
    w2, b2 = conv_p(ks[2], ks[3], 32, 16, 3)
    w3, b3 = conv_p(ks[4], ks[5], 64, 32, 3)
    w4, b4 = conv_p(ks[6], ks[7], 64, 64, 3)
    bound = 1.0 / np.sqrt(64)
    wfc = jax.random.uniform(ks[8], (2, 64), jnp.float32, -bound, bound)
    bfc = jax.random.uniform(ks[9], (2,), jnp.float32, -bound, bound)
    return dict(w1=w1, b1=b1, w2=w2, b2=b2, w3=w3, b3=b3, w4=w4, b4=b4,
                wfc=wfc, bfc=bfc)


if __name__ == "__main__":
    key = jax.random.PRNGKey(0)
    kx, kp = jax.random.split(key)

    B, Cin, L = 2, 2, 16                               # small NCL input
    x = jax.random.normal(kx, (B, Cin, L), dtype=jnp.float32)
    params = init_params(kp)
    kparams = prepare_params(params)                   # once, outside jit

    out = jax.block_until_ready(cnn_forward(x, kparams))
    assert out.shape == (B, 2) and out.dtype == jnp.float32

    ref = jax.block_until_ready(ref_forward(x, params))
    # bf16 MXU operands (per perf review) -> relaxed tolerance vs f32 reference
    np.testing.assert_allclose(np.asarray(out), np.asarray(ref),
                               rtol=5e-2, atol=5e-2)

    print("KERNEL_OK")
</pallas_src>

<mosaic_0001>
module attributes {stable_mosaic.version = 11 : i64} {
  func.func @fused_cnn_kernel(%arg0: i32, %arg1: memref<2x16x2xf32, #tpu.memory_space<vmem>>, %arg2: memref<5x2x16xbf16, #tpu.memory_space<vmem>>, %arg3: memref<1x16xf32, #tpu.memory_space<vmem>>, %arg4: memref<3x16x32xbf16, #tpu.memory_space<vmem>>, %arg5: memref<1x32xf32, #tpu.memory_space<vmem>>, %arg6: memref<3x32x64xbf16, #tpu.memory_space<vmem>>, %arg7: memref<1x64xf32, #tpu.memory_space<vmem>>, %arg8: memref<3x64x64xbf16, #tpu.memory_space<vmem>>, %arg9: memref<1x64xf32, #tpu.memory_space<vmem>>, %arg10: memref<64x2xf32, #tpu.memory_space<vmem>>, %arg11: memref<1x2xf32, #tpu.memory_space<vmem>>, %arg12: memref<2x2xf32, #tpu.memory_space<vmem>>, %arg13: memref<2x32x2xf32, #tpu.memory_space<vmem>>, %arg14: memref<2x32x16xf32, #tpu.memory_space<vmem>>, %arg15: memref<2x24x32xf32, #tpu.memory_space<vmem>>, %arg16: memref<2x24x64xf32, #tpu.memory_space<vmem>>) attributes {dimension_semantics = [#tpu.dimension_semantics<parallel>], iteration_bounds = array<i64: 1>, scalar_prefetch = 0 : i64, scratch_operands = 4 : i64, tpu.core_type = #tpu.core_type<tc>, window_params = [{transform_indices = @transform_0, window_bounds = array<i64: 2, 16, 2>}, {pipeline_mode = #tpu.pipeline_mode<synchronous>, transform_indices = @transform_1, window_bounds = array<i64: 5, 2, 16>}, {pipeline_mode = #tpu.pipeline_mode<synchronous>, transform_indices = @transform_2, window_bounds = array<i64: 1, 16>}, {pipeline_mode = #tpu.pipeline_mode<synchronous>, transform_indices = @transform_3, window_bounds = array<i64: 3, 16, 32>}, {pipeline_mode = #tpu.pipeline_mode<synchronous>, transform_indices = @transform_4, window_bounds = array<i64: 1, 32>}, {pipeline_mode = #tpu.pipeline_mode<synchronous>, transform_indices = @transform_5, window_bounds = array<i64: 3, 32, 64>}, {pipeline_mode = #tpu.pipeline_mode<synchronous>, transform_indices = @transform_6, window_bounds = array<i64: 1, 64>}, {pipeline_mode = #tpu.pipeline_mode<synchronous>, transform_indices = @transform_7, window_bounds = array<i64: 3, 64, 64>}, {pipeline_mode = #tpu.pipeline_mode<synchronous>, transform_indices = @transform_8, window_bounds = array<i64: 1, 64>}, {pipeline_mode = #tpu.pipeline_mode<synchronous>, transform_indices = @transform_9, window_bounds = array<i64: 64, 2>}, {pipeline_mode = #tpu.pipeline_mode<synchronous>, transform_indices = @transform_10, window_bounds = array<i64: 1, 2>}, {transform_indices = @transform_11, window_bounds = array<i64: 2, 2>}]} {
    %c0 = arith.constant 0 : index
    %c0_0 = arith.constant 0 : index
    %c0_1 = arith.constant 0 : index
    %0 = vector.load %arg1[%c0, %c0_0, %c0_1] : memref<2x16x2xf32, #tpu.memory_space<vmem>>, vector<2x16x2xf32>
    %cst = arith.constant 0.000000e+00 : f32
    %1 = vector.broadcast %cst : f32 to vector<2x2x2xf32>
    %c0_2 = arith.constant 0 : index
    %c6 = arith.constant 6 : index
    %c0_3 = arith.constant 0 : index
    %2 = vector.load %arg13[%c0_2, %c6, %c0_3] : memref<2x32x2xf32, #tpu.memory_space<vmem>>, vector<2x2x2xf32>
    tpu.vector_store %arg13[%c0_2, %c6, %c0_3], %1 {strides = array<i32>} : memref<2x32x2xf32, #tpu.memory_space<vmem>>, vector<2x2x2xf32>,
    %c0_4 = arith.constant 0 : index
    %c24 = arith.constant 24 : index
    %c0_5 = arith.constant 0 : index
    %3 = vector.load %arg13[%c0_4, %c24, %c0_5] : memref<2x32x2xf32, #tpu.memory_space<vmem>>, vector<2x2x2xf32>
    tpu.vector_store %arg13[%c0_4, %c24, %c0_5], %1 {strides = array<i32>} : memref<2x32x2xf32, #tpu.memory_space<vmem>>, vector<2x2x2xf32>,
    %c0_6 = arith.constant 0 : index
    %c8 = arith.constant 8 : index
    %c0_7 = arith.constant 0 : index
    %4 = vector.load %arg13[%c0_6, %c8, %c0_7] : memref<2x32x2xf32, #tpu.memory_space<vmem>>, vector<2x16x2xf32>
    tpu.vector_store %arg13[%c0_6, %c8, %c0_7], %0 {strides = array<i32>} : memref<2x32x2xf32, #tpu.memory_space<vmem>>, vector<2x16x2xf32>,
    %cst_8 = arith.constant 0.000000e+00 : f32
    %5 = vector.broadcast %cst_8 : f32 to vector<32x16xf32>
    %c0_9 = arith.constant 0 : index
    %c6_10 = arith.constant 6 : index
    %c0_11 = arith.constant 0 : index
    %6 = vector.load %arg13[%c0_9, %c6_10, %c0_11] : memref<2x32x2xf32, #tpu.memory_space<vmem>>, vector<2x16x2xf32>
    %7 = vector.shape_cast %6 : vector<2x16x2xf32> to vector<32x2xf32>
    %8 = arith.truncf %7 : vector<32x2xf32> to vector<32x2xbf16>
    %c0_12 = arith.constant 0 : index
    %c0_13 = arith.constant 0 : index
    %c0_14 = arith.constant 0 : index
    %9 = vector.load %arg2[%c0_12, %c0_13, %c0_14] : memref<5x2x16xbf16, #tpu.memory_space<vmem>>, vector<1x2x16xbf16>
    %10 = vector.shape_cast %9 : vector<1x2x16xbf16> to vector<2x16xbf16>
    %cst_15 = arith.constant dense<0.000000e+00> : vector<32x16xf32>
    %11 = tpu.matmul %8, %10, %cst_15 {dimension_numbers = #tpu.dot_dimension_numbers<[1], [0], [0], [1], [0, 0, 1, 1], [], []>} : vector<32x2xbf16>, vector<2x16xbf16>, vector<32x16xf32> -> vector<32x16xf32>
    %12 = arith.addf %5, %11 : vector<32x16xf32>
    %c0_16 = arith.constant 0 : index
    %c7 = arith.constant 7 : index
    %c0_17 = arith.constant 0 : index
    %13 = vector.load %arg13[%c0_16, %c7, %c0_17] : memref<2x32x2xf32, #tpu.memory_space<vmem>>, vector<2x16x2xf32>
    %14 = vector.shape_cast %13 : vector<2x16x2xf32> to vector<32x2xf32>
    %15 = arith.truncf %14 : vector<32x2xf32> to vector<32x2xbf16>
    %c1 = arith.constant 1 : index
    %c0_18 = arith.constant 0 : index
    %c0_19 = arith.constant 0 : index
    %16 = vector.load %arg2[%c1, %c0_18, %c0_19] : memref<5x2x16xbf16, #tpu.memory_space<vmem>>, vector<1x2x16xbf16>
    %17 = vector.shape_cast %16 : vector<1x2x16xbf16> to vector<2x16xbf16>
    %cst_20 = arith.constant dense<0.000000e+00> : vector<32x16xf32>
    %18 = tpu.matmul %15, %17, %cst_20 {dimension_numbers = #tpu.dot_dimension_numbers<[1], [0], [0], [1], [0, 0, 1, 1], [], []>} : vector<32x2xbf16>, vector<2x16xbf16>, vector<32x16xf32> -> vector<32x16xf32>
    %19 = arith.addf %12, %18 : vector<32x16xf32>
    %c0_21 = arith.constant 0 : index
    %c8_22 = arith.constant 8 : index
    %c0_23 = arith.constant 0 : index
    %20 = vector.load %arg13[%c0_21, %c8_22, %c0_23] : memref<2x32x2xf32, #tpu.memory_space<vmem>>, vector<2x16x2xf32>
    %21 = vector.shape_cast %20 : vector<2x16x2xf32> to vector<32x2xf32>
    %22 = arith.truncf %21 : vector<32x2xf32> to vector<32x2xbf16>
    %c2 = arith.constant 2 : index
    %c0_24 = arith.constant 0 : index
    %c0_25 = arith.constant 0 : index
    %23 = vector.load %arg2[%c2, %c0_24, %c0_25] : memref<5x2x16xbf16, #tpu.memory_space<vmem>>, vector<1x2x16xbf16>
    %24 = vector.shape_cast %23 : vector<1x2x16xbf16> to vector<2x16xbf16>
    %cst_26 = arith.constant dense<0.000000e+00> : vector<32x16xf32>
    %25 = tpu.matmul %22, %24, %cst_26 {dimension_numbers = #tpu.dot_dimension_numbers<[1], [0], [0], [1], [0, 0, 1, 1], [], []>} : vector<32x2xbf16>, vector<2x16xbf16>, vector<32x16xf32> -> vector<32x16xf32>
    %26 = arith.addf %19, %25 : vector<32x16xf32>
    %c0_27 = arith.constant 0 : index
    %c9 = arith.constant 9 : index
    %c0_28 = arith.constant 0 : index
    %27 = vector.load %arg13[%c0_27, %c9, %c0_28] : memref<2x32x2xf32, #tpu.memory_space<vmem>>, vector<2x16x2xf32>
    %28 = vector.shape_cast %27 : vector<2x16x2xf32> to vector<32x2xf32>
    %29 = arith.truncf %28 : vector<32x2xf32> to vector<32x2xbf16>
    %c3 = arith.constant 3 : index
    %c0_29 = arith.constant 0 : index
    %c0_30 = arith.constant 0 : index
    %30 = vector.load %arg2[%c3, %c0_29, %c0_30] : memref<5x2x16xbf16, #tpu.memory_space<vmem>>, vector<1x2x16xbf16>
    %31 = vector.shape_cast %30 : vector<1x2x16xbf16> to vector<2x16xbf16>
    %cst_31 = arith.constant dense<0.000000e+00> : vector<32x16xf32>
    %32 = tpu.matmul %29, %31, %cst_31 {dimension_numbers = #tpu.dot_dimension_numbers<[1], [0], [0], [1], [0, 0, 1, 1], [], []>} : vector<32x2xbf16>, vector<2x16xbf16>, vector<32x16xf32> -> vector<32x16xf32>
    %33 = arith.addf %26, %32 : vector<32x16xf32>
    %c0_32 = arith.constant 0 : index
    %c10 = arith.constant 10 : index
    %c0_33 = arith.constant 0 : index
    %34 = vector.load %arg13[%c0_32, %c10, %c0_33] : memref<2x32x2xf32, #tpu.memory_space<vmem>>, vector<2x16x2xf32>
    %35 = vector.shape_cast %34 : vector<2x16x2xf32> to vector<32x2xf32>
    %36 = arith.truncf %35 : vector<32x2xf32> to vector<32x2xbf16>
    %c4 = arith.constant 4 : index
    %c0_34 = arith.constant 0 : index
    %c0_35 = arith.constant 0 : index
    %37 = vector.load %arg2[%c4, %c0_34, %c0_35] : memref<5x2x16xbf16, #tpu.memory_space<vmem>>, vector<1x2x16xbf16>
    %38 = vector.shape_cast %37 : vector<1x2x16xbf16> to vector<2x16xbf16>
    %cst_36 = arith.constant dense<0.000000e+00> : vector<32x16xf32>
    %39 = tpu.matmul %36, %38, %cst_36 {dimension_numbers = #tpu.dot_dimension_numbers<[1], [0], [0], [1], [0, 0, 1, 1], [], []>} : vector<32x2xbf16>, vector<2x16xbf16>, vector<32x16xf32> -> vector<32x16xf32>
    %40 = arith.addf %33, %39 : vector<32x16xf32>
    %c0_37 = arith.constant 0 : index
    %c0_38 = arith.constant 0 : index
    %41 = vector.load %arg3[%c0_37, %c0_38] : memref<1x16xf32, #tpu.memory_space<vmem>>, vector<1x16xf32>
    %42 = vector.broadcast %41 : vector<1x16xf32> to vector<32x16xf32>
    %43 = arith.addf %40, %42 : vector<32x16xf32>
    %cst_39 = arith.constant 0.000000e+00 : f32
    %44 = vector.broadcast %cst_39 : f32 to vector<32x16xf32>
    %45 = arith.maximumf %43, %44 : vector<32x16xf32>
    %46 = vector.shape_cast %45 : vector<32x16xf32> to vector<2x16x16xf32>
    %cst_40 = arith.constant 0.000000e+00 : f32
    %47 = vector.broadcast %cst_40 : f32 to vector<2x1x16xf32>
    %c0_41 = arith.constant 0 : index
    %c7_42 = arith.constant 7 : index
    %c0_43 = arith.constant 0 : index
    %48 = vector.load %arg14[%c0_41, %c7_42, %c0_43] : memref<2x32x16xf32, #tpu.memory_space<vmem>>, vector<2x1x16xf32>
    tpu.vector_store %arg14[%c0_41, %c7_42, %c0_43], %47 {strides = array<i32>} : memref<2x32x16xf32, #tpu.memory_space<vmem>>, vector<2x1x16xf32>,
    %c0_44 = arith.constant 0 : index
    %c24_45 = arith.constant 24 : index
    %c0_46 = arith.constant 0 : index
    %49 = vector.load %arg14[%c0_44, %c24_45, %c0_46] : memref<2x32x16xf32, #tpu.memory_space<vmem>>, vector<2x1x16xf32>
    tpu.vector_store %arg14[%c0_44, %c24_45, %c0_46], %47 {strides = array<i32>} : memref<2x32x16xf32, #tpu.memory_space<vmem>>, vector<2x1x16xf32>,
    %c0_47 = arith.constant 0 : index
    %c8_48 = arith.constant 8 : index
    %c0_49 = arith.constant 0 : index
    %50 = vector.load %arg14[%c0_47, %c8_48, %c0_49] : memref<2x32x16xf32, #tpu.memory_space<vmem>>, vector<2x16x16xf32>
    tpu.vector_store %arg14[%c0_47, %c8_48, %c0_49], %46 {strides = array<i32>} : memref<2x32x16xf32, #tpu.memory_space<vmem>>, vector<2x16x16xf32>,
    %cst_50 = arith.constant 0.000000e+00 : f32
    %51 = vector.broadcast %cst_50 : f32 to vector<16x32xf32>
    %c0_51 = arith.constant 0 : index
    %c7_52 = arith.constant 7 : index
    %c0_53 = arith.constant 0 : index
    %52 = tpu.strided_load %arg14[%c0_51, %c7_52, %c0_53] {strides = array<i32: 1, 2, 1>} : memref<2x32x16xf32, #tpu.memory_space<vmem>>, vector<2x8x16xf32>
    %53 = vector.shape_cast %52 : vector<2x8x16xf32> to vector<16x16xf32>
    %54 = arith.truncf %53 : vector<16x16xf32> to vector<16x16xbf16>
    %c0_54 = arith.constant 0 : index
    %c0_55 = arith.constant 0 : index
    %c0_56 = arith.constant 0 : index
    %55 = vector.load %arg4[%c0_54, %c0_55, %c0_56] : memref<3x16x32xbf16, #tpu.memory_space<vmem>>, vector<1x16x32xbf16>
    %56 = vector.shape_cast %55 : vector<1x16x32xbf16> to vector<16x32xbf16>
    %cst_57 = arith.constant dense<0.000000e+00> : vector<16x32xf32>
    %57 = tpu.matmul %54, %56, %cst_57 {dimension_numbers = #tpu.dot_dimension_numbers<[1], [0], [0], [1], [0, 0, 1, 1], [], []>} : vector<16x16xbf16>, vector<16x32xbf16>, vector<16x32xf32> -> vector<16x32xf32>
    %58 = arith.addf %51, %57 : vector<16x32xf32>
    %c0_58 = arith.constant 0 : index
    %c8_59 = arith.constant 8 : index
    %c0_60 = arith.constant 0 : index
    %59 = tpu.strided_load %arg14[%c0_58, %c8_59, %c0_60] {strides = array<i32: 1, 2, 1>} : memref<2x32x16xf32, #tpu.memory_space<vmem>>, vector<2x8x16xf32>
    %60 = vector.shape_cast %59 : vector<2x8x16xf32> to vector<16x16xf32>
    %61 = arith.truncf %60 : vector<16x16xf32> to vector<16x16xbf16>
    %c1_61 = arith.constant 1 : index
    %c0_62 = arith.constant 0 : index
    %c0_63 = arith.constant 0 : index
    %62 = vector.load %arg4[%c1_61, %c0_62, %c0_63] : memref<3x16x32xbf16, #tpu.memory_space<vmem>>, vector<1x16x32xbf16>
    %63 = vector.shape_cast %62 : vector<1x16x32xbf16> to vector<16x32xbf16>
    %cst_64 = arith.constant dense<0.000000e+00> : vector<16x32xf32>
    %64 = tpu.matmul %61, %63, %cst_64 {dimension_numbers = #tpu.dot_dimension_numbers<[1], [0], [0], [1], [0, 0, 1, 1], [], []>} : vector<16x16xbf16>, vector<16x32xbf16>, vector<16x32xf32> -> vector<16x32xf32>
    %65 = arith.addf %58, %64 : vector<16x32xf32>
    %c0_65 = arith.constant 0 : index
    %c9_66 = arith.constant 9 : index
    %c0_67 = arith.constant 0 : index
    %66 = tpu.strided_load %arg14[%c0_65, %c9_66, %c0_67] {strides = array<i32: 1, 2, 1>} : memref<2x32x16xf32, #tpu.memory_space<vmem>>, vector<2x8x16xf32>
    %67 = vector.shape_cast %66 : vector<2x8x16xf32> to vector<16x16xf32>
    %68 = arith.truncf %67 : vector<16x16xf32> to vector<16x16xbf16>
    %c2_68 = arith.constant 2 : index
    %c0_69 = arith.constant 0 : index
    %c0_70 = arith.constant 0 : index
    %69 = vector.load %arg4[%c2_68, %c0_69, %c0_70] : memref<3x16x32xbf16, #tpu.memory_space<vmem>>, vector<1x16x32xbf16>
    %70 = vector.shape_cast %69 : vector<1x16x32xbf16> to vector<16x32xbf16>
    %cst_71 = arith.constant dense<0.000000e+00> : vector<16x32xf32>
    %71 = tpu.matmul %68, %70, %cst_71 {dimension_numbers = #tpu.dot_dimension_numbers<[1], [0], [0], [1], [0, 0, 1, 1], [], []>} : vector<16x16xbf16>, vector<16x32xbf16>, vector<16x32xf32> -> vector<16x32xf32>
    %72 = arith.addf %65, %71 : vector<16x32xf32>
    %c0_72 = arith.constant 0 : index
    %c0_73 = arith.constant 0 : index
    %73 = vector.load %arg5[%c0_72, %c0_73] : memref<1x32xf32, #tpu.memory_space<vmem>>, vector<1x32xf32>
    %74 = vector.broadcast %73 : vector<1x32xf32> to vector<16x32xf32>
    %75 = arith.addf %72, %74 : vector<16x32xf32>
    %cst_74 = arith.constant 0.000000e+00 : f32
    %76 = vector.broadcast %cst_74 : f32 to vector<16x32xf32>
    %77 = arith.maximumf %75, %76 : vector<16x32xf32>
    %cst_75 = arith.constant 0.000000e+00 : f32
    %78 = vector.broadcast %cst_75 : f32 to vector<16x32xf32>
    %c0_76 = arith.constant 0 : index
    %c8_77 = arith.constant 8 : index
    %c0_78 = arith.constant 0 : index
    %79 = tpu.strided_load %arg14[%c0_76, %c8_77, %c0_78] {strides = array<i32: 1, 2, 1>} : memref<2x32x16xf32, #tpu.memory_space<vmem>>, vector<2x8x16xf32>
    %80 = vector.shape_cast %79 : vector<2x8x16xf32> to vector<16x16xf32>
    %81 = arith.truncf %80 : vector<16x16xf32> to vector<16x16xbf16>
    %c0_79 = arith.constant 0 : index
    %c0_80 = arith.constant 0 : index
    %c0_81 = arith.constant 0 : index
    %82 = vector.load %arg4[%c0_79, %c0_80, %c0_81] : memref<3x16x32xbf16, #tpu.memory_space<vmem>>, vector<1x16x32xbf16>
    %83 = vector.shape_cast %82 : vector<1x16x32xbf16> to vector<16x32xbf16>
    %cst_82 = arith.constant dense<0.000000e+00> : vector<16x32xf32>
    %84 = tpu.matmul %81, %83, %cst_82 {dimension_numbers = #tpu.dot_dimension_numbers<[1], [0], [0], [1], [0, 0, 1, 1], [], []>} : vector<16x16xbf16>, vector<16x32xbf16>, vector<16x32xf32> -> vector<16x32xf32>
    %85 = arith.addf %78, %84 : vector<16x32xf32>
    %c0_83 = arith.constant 0 : index
    %c9_84 = arith.constant 9 : index
    %c0_85 = arith.constant 0 : index
    %86 = tpu.strided_load %arg14[%c0_83, %c9_84, %c0_85] {strides = array<i32: 1, 2, 1>} : memref<2x32x16xf32, #tpu.memory_space<vmem>>, vector<2x8x16xf32>
    %87 = vector.shape_cast %86 : vector<2x8x16xf32> to vector<16x16xf32>
    %88 = arith.truncf %87 : vector<16x16xf32> to vector<16x16xbf16>
    %c1_86 = arith.constant 1 : index
    %c0_87 = arith.constant 0 : index
    %c0_88 = arith.constant 0 : index
    %89 = vector.load %arg4[%c1_86, %c0_87, %c0_88] : memref<3x16x32xbf16, #tpu.memory_space<vmem>>, vector<1x16x32xbf16>
    %90 = vector.shape_cast %89 : vector<1x16x32xbf16> to vector<16x32xbf16>
    %cst_89 = arith.constant dense<0.000000e+00> : vector<16x32xf32>
    %91 = tpu.matmul %88, %90, %cst_89 {dimension_numbers = #tpu.dot_dimension_numbers<[1], [0], [0], [1], [0, 0, 1, 1], [], []>} : vector<16x16xbf16>, vector<16x32xbf16>, vector<16x32xf32> -> vector<16x32xf32>
    %92 = arith.addf %85, %91 : vector<16x32xf32>
    %c0_90 = arith.constant 0 : index
    %c10_91 = arith.constant 10 : index
    %c0_92 = arith.constant 0 : index
    %93 = tpu.strided_load %arg14[%c0_90, %c10_91, %c0_92] {strides = array<i32: 1, 2, 1>} : memref<2x32x16xf32, #tpu.memory_space<vmem>>, vector<2x8x16xf32>
    %94 = vector.shape_cast %93 : vector<2x8x16xf32> to vector<16x16xf32>
    %95 = arith.truncf %94 : vector<16x16xf32> to vector<16x16xbf16>
    %c2_93 = arith.constant 2 : index
    %c0_94 = arith.constant 0 : index
    %c0_95 = arith.constant 0 : index
    %96 = vector.load %arg4[%c2_93, %c0_94, %c0_95] : memref<3x16x32xbf16, #tpu.memory_space<vmem>>, vector<1x16x32xbf16>
    %97 = vector.shape_cast %96 : vector<1x16x32xbf16> to vector<16x32xbf16>
    %cst_96 = arith.constant dense<0.000000e+00> : vector<16x32xf32>
    %98 = tpu.matmul %95, %97, %cst_96 {dimension_numbers = #tpu.dot_dimension_numbers<[1], [0], [0], [1], [0, 0, 1, 1], [], []>} : vector<16x16xbf16>, vector<16x32xbf16>, vector<16x32xf32> -> vector<16x32xf32>
    %99 = arith.addf %92, %98 : vector<16x32xf32>
    %c0_97 = arith.constant 0 : index
    %c0_98 = arith.constant 0 : index
    %100 = vector.load %arg5[%c0_97, %c0_98] : memref<1x32xf32, #tpu.memory_space<vmem>>, vector<1x32xf32>
    %101 = vector.broadcast %100 : vector<1x32xf32> to vector<16x32xf32>
    %102 = arith.addf %99, %101 : vector<16x32xf32>
    %cst_99 = arith.constant 0.000000e+00 : f32
    %103 = vector.broadcast %cst_99 : f32 to vector<16x32xf32>
    %104 = arith.maximumf %102, %103 : vector<16x32xf32>
    %105 = arith.addf %77, %104 : vector<16x32xf32>
    %cst_100 = arith.constant 5.000000e-01 : f32
    %106 = vector.broadcast %cst_100 : f32 to vector<16x32xf32>
    %107 = arith.mulf %106, %105 : vector<16x32xf32>
    %108 = vector.shape_cast %107 : vector<16x32xf32> to vector<2x8x32xf32>
    %cst_101 = arith.constant 0.000000e+00 : f32
    %109 = vector.broadcast %cst_101 : f32 to vector<2x1x32xf32>
    %c0_102 = arith.constant 0 : index
    %c7_103 = arith.constant 7 : index
    %c0_104 = arith.constant 0 : index
    %110 = vector.load %arg15[%c0_102, %c7_103, %c0_104] : memref<2x24x32xf32, #tpu.memory_space<vmem>>, vector<2x1x32xf32>
    tpu.vector_store %arg15[%c0_102, %c7_103, %c0_104], %109 {strides = array<i32>} : memref<2x24x32xf32, #tpu.memory_space<vmem>>, vector<2x1x32xf32>,
    %c0_105 = arith.constant 0 : index
    %c16 = arith.constant 16 : index
    %c0_106 = arith.constant 0 : index
    %111 = vector.load %arg15[%c0_105, %c16, %c0_106] : memref<2x24x32xf32, #tpu.memory_space<vmem>>, vector<2x1x32xf32>
    tpu.vector_store %arg15[%c0_105, %c16, %c0_106], %109 {strides = array<i32>} : memref<2x24x32xf32, #tpu.memory_space<vmem>>, vector<2x1x32xf32>,
    %c0_107 = arith.constant 0 : index
    %c8_108 = arith.constant 8 : index
    %c0_109 = arith.constant 0 : index
    %112 = vector.load %arg15[%c0_107, %c8_108, %c0_109] : memref<2x24x32xf32, #tpu.memory_space<vmem>>, vector<2x8x32xf32>
    tpu.vector_store %arg15[%c0_107, %c8_108, %c0_109], %108 {strides = array<i32>} : memref<2x24x32xf32, #tpu.memory_space<vmem>>, vector<2x8x32xf32>,
    %cst_110 = arith.constant 0.000000e+00 : f32
    %113 = vector.broadcast %cst_110 : f32 to vector<16x64xf32>
    %c0_111 = arith.constant 0 : index
    %c7_112 = arith.constant 7 : index
    %c0_113 = arith.constant 0 : index
    %114 = vector.load %arg15[%c0_111, %c7_112, %c0_113] : memref<2x24x32xf32, #tpu.memory_space<vmem>>, vector<2x8x32xf32>
    %115 = vector.shape_cast %114 : vector<2x8x32xf32> to vector<16x32xf32>
    %116 = arith.truncf %115 : vector<16x32xf32> to vector<16x32xbf16>
    %c0_114 = arith.constant 0 : index
    %c0_115 = arith.constant 0 : index
    %c0_116 = arith.constant 0 : index
    %117 = vector.load %arg6[%c0_114, %c0_115, %c0_116] : memref<3x32x64xbf16, #tpu.memory_space<vmem>>, vector<1x32x64xbf16>
    %118 = vector.shape_cast %117 : vector<1x32x64xbf16> to vector<32x64xbf16>
    %cst_117 = arith.constant dense<0.000000e+00> : vector<16x64xf32>
    %119 = tpu.matmul %116, %118, %cst_117 {dimension_numbers = #tpu.dot_dimension_numbers<[1], [0], [0], [1], [0, 0, 1, 1], [], []>} : vector<16x32xbf16>, vector<32x64xbf16>, vector<16x64xf32> -> vector<16x64xf32>
    %120 = arith.addf %113, %119 : vector<16x64xf32>
    %c0_118 = arith.constant 0 : index
    %c8_119 = arith.constant 8 : index
    %c0_120 = arith.constant 0 : index
    %121 = vector.load %arg15[%c0_118, %c8_119, %c0_120] : memref<2x24x32xf32, #tpu.memory_space<vmem>>, vector<2x8x32xf32>
    %122 = vector.shape_cast %121 : vector<2x8x32xf32> to vector<16x32xf32>
    %123 = arith.truncf %122 : vector<16x32xf32> to vector<16x32xbf16>
    %c1_121 = arith.constant 1 : index
    %c0_122 = arith.constant 0 : index
    %c0_123 = arith.constant 0 : index
    %124 = vector.load %arg6[%c1_121, %c0_122, %c0_123] : memref<3x32x64xbf16, #tpu.memory_space<vmem>>, vector<1x32x64xbf16>
    %125 = vector.shape_cast %124 : vector<1x32x64xbf16> to vector<32x64xbf16>
    %cst_124 = arith.constant dense<0.000000e+00> : vector<16x64xf32>
    %126 = tpu.matmul %123, %125, %cst_124 {dimension_numbers = #tpu.dot_dimension_numbers<[1], [0], [0], [1], [0, 0, 1, 1], [], []>} : vector<16x32xbf16>, vector<32x64xbf16>, vector<16x64xf32> -> vector<16x64xf32>
    %127 = arith.addf %120, %126 : vector<16x64xf32>
    %c0_125 = arith.constant 0 : index
    %c9_126 = arith.constant 9 : index
    %c0_127 = arith.constant 0 : index
    %128 = vector.load %arg15[%c0_125, %c9_126, %c0_127] : memref<2x24x32xf32, #tpu.memory_space<vmem>>, vector<2x8x32xf32>
    %129 = vector.shape_cast %128 : vector<2x8x32xf32> to vector<16x32xf32>
    %130 = arith.truncf %129 : vector<16x32xf32> to vector<16x32xbf16>
    %c2_128 = arith.constant 2 : index
    %c0_129 = arith.constant 0 : index
    %c0_130 = arith.constant 0 : index
    %131 = vector.load %arg6[%c2_128, %c0_129, %c0_130] : memref<3x32x64xbf16, #tpu.memory_space<vmem>>, vector<1x32x64xbf16>
    %132 = vector.shape_cast %131 : vector<1x32x64xbf16> to vector<32x64xbf16>
    %cst_131 = arith.constant dense<0.000000e+00> : vector<16x64xf32>
    %133 = tpu.matmul %130, %132, %cst_131 {dimension_numbers = #tpu.dot_dimension_numbers<[1], [0], [0], [1], [0, 0, 1, 1], [], []>} : vector<16x32xbf16>, vector<32x64xbf16>, vector<16x64xf32> -> vector<16x64xf32>
    %134 = arith.addf %127, %133 : vector<16x64xf32>
    %c0_132 = arith.constant 0 : index
    %c0_133 = arith.constant 0 : index
    %135 = vector.load %arg7[%c0_132, %c0_133] : memref<1x64xf32, #tpu.memory_space<vmem>>, vector<1x64xf32>
    %136 = vector.broadcast %135 : vector<1x64xf32> to vector<16x64xf32>
    %137 = arith.addf %134, %136 : vector<16x64xf32>
    %cst_134 = arith.constant 0.000000e+00 : f32
    %138 = vector.broadcast %cst_134 : f32 to vector<16x64xf32>
    %139 = arith.maximumf %137, %138 : vector<16x64xf32>
    %140 = vector.shape_cast %139 : vector<16x64xf32> to vector<2x8x64xf32>
    %cst_135 = arith.constant 0.000000e+00 : f32
    %141 = vector.broadcast %cst_135 : f32 to vector<2x1x64xf32>
    %c0_136 = arith.constant 0 : index
    %c7_137 = arith.constant 7 : index
    %c0_138 = arith.constant 0 : index
    %142 = vector.load %arg16[%c0_136, %c7_137, %c0_138] : memref<2x24x64xf32, #tpu.memory_space<vmem>>, vector<2x1x64xf32>
    tpu.vector_store %arg16[%c0_136, %c7_137, %c0_138], %141 {strides = array<i32>} : memref<2x24x64xf32, #tpu.memory_space<vmem>>, vector<2x1x64xf32>,
    %c0_139 = arith.constant 0 : index
    %c16_140 = arith.constant 16 : index
    %c0_141 = arith.constant 0 : index
    %143 = vector.load %arg16[%c0_139, %c16_140, %c0_141] : memref<2x24x64xf32, #tpu.memory_space<vmem>>, vector<2x1x64xf32>
    tpu.vector_store %arg16[%c0_139, %c16_140, %c0_141], %141 {strides = array<i32>} : memref<2x24x64xf32, #tpu.memory_space<vmem>>, vector<2x1x64xf32>,
    %c0_142 = arith.constant 0 : index
    %c8_143 = arith.constant 8 : index
    %c0_144 = arith.constant 0 : index
    %144 = vector.load %arg16[%c0_142, %c8_143, %c0_144] : memref<2x24x64xf32, #tpu.memory_space<vmem>>, vector<2x8x64xf32>
    tpu.vector_store %arg16[%c0_142, %c8_143, %c0_144], %140 {strides = array<i32>} : memref<2x24x64xf32, #tpu.memory_space<vmem>>, vector<2x8x64xf32>,
    %cst_145 = arith.constant 0.000000e+00 : f32
    %145 = vector.broadcast %cst_145 : f32 to vector<16x64xf32>
    %c0_146 = arith.constant 0 : index
    %c7_147 = arith.constant 7 : index
    %c0_148 = arith.constant 0 : index
    %146 = vector.load %arg16[%c0_146, %c7_147, %c0_148] : memref<2x24x64xf32, #tpu.memory_space<vmem>>, vector<2x8x64xf32>
    %147 = vector.shape_cast %146 : vector<2x8x64xf32> to vector<16x64xf32>
    %148 = arith.truncf %147 : vector<16x64xf32> to vector<16x64xbf16>
    %c0_149 = arith.constant 0 : index
    %c0_150 = arith.constant 0 : index
    %c0_151 = arith.constant 0 : index
    %149 = vector.load %arg8[%c0_149, %c0_150, %c0_151] : memref<3x64x64xbf16, #tpu.memory_space<vmem>>, vector<1x64x64xbf16>
    %150 = vector.shape_cast %149 : vector<1x64x64xbf16> to vector<64x64xbf16>
    %cst_152 = arith.constant dense<0.000000e+00> : vector<16x64xf32>
    %151 = tpu.matmul %148, %150, %cst_152 {dimension_numbers = #tpu.dot_dimension_numbers<[1], [0], [0], [1], [0, 0, 1, 1], [], []>} : vector<16x64xbf16>, vector<64x64xbf16>, vector<16x64xf32> -> vector<16x64xf32>
    %152 = arith.addf %145, %151 : vector<16x64xf32>
    %c0_153 = arith.constant 0 : index
    %c8_154 = arith.constant 8 : index
    %c0_155 = arith.constant 0 : index
    %153 = vector.load %arg16[%c0_153, %c8_154, %c0_155] : memref<2x24x64xf32, #tpu.memory_space<vmem>>, vector<2x8x64xf32>
    %154 = vector.shape_cast %153 : vector<2x8x64xf32> to vector<16x64xf32>
    %155 = arith.truncf %154 : vector<16x64xf32> to vector<16x64xbf16>
    %c1_156 = arith.constant 1 : index
    %c0_157 = arith.constant 0 : index
    %c0_158 = arith.constant 0 : index
    %156 = vector.load %arg8[%c1_156, %c0_157, %c0_158] : memref<3x64x64xbf16, #tpu.memory_space<vmem>>, vector<1x64x64xbf16>
    %157 = vector.shape_cast %156 : vector<1x64x64xbf16> to vector<64x64xbf16>
    %cst_159 = arith.constant dense<0.000000e+00> : vector<16x64xf32>
    %158 = tpu.matmul %155, %157, %cst_159 {dimension_numbers = #tpu.dot_dimension_numbers<[1], [0], [0], [1], [0, 0, 1, 1], [], []>} : vector<16x64xbf16>, vector<64x64xbf16>, vector<16x64xf32> -> vector<16x64xf32>
    %159 = arith.addf %152, %158 : vector<16x64xf32>
    %c0_160 = arith.constant 0 : index
    %c9_161 = arith.constant 9 : index
    %c0_162 = arith.constant 0 : index
    %160 = vector.load %arg16[%c0_160, %c9_161, %c0_162] : memref<2x24x64xf32, #tpu.memory_space<vmem>>, vector<2x8x64xf32>
    %161 = vector.shape_cast %160 : vector<2x8x64xf32> to vector<16x64xf32>
    %162 = arith.truncf %161 : vector<16x64xf32> to vector<16x64xbf16>
    %c2_163 = arith.constant 2 : index
    %c0_164 = arith.constant 0 : index
    %c0_165 = arith.constant 0 : index
    %163 = vector.load %arg8[%c2_163, %c0_164, %c0_165] : memref<3x64x64xbf16, #tpu.memory_space<vmem>>, vector<1x64x64xbf16>
    %164 = vector.shape_cast %163 : vector<1x64x64xbf16> to vector<64x64xbf16>
    %cst_166 = arith.constant dense<0.000000e+00> : vector<16x64xf32>
    %165 = tpu.matmul %162, %164, %cst_166 {dimension_numbers = #tpu.dot_dimension_numbers<[1], [0], [0], [1], [0, 0, 1, 1], [], []>} : vector<16x64xbf16>, vector<64x64xbf16>, vector<16x64xf32> -> vector<16x64xf32>
    %166 = arith.addf %159, %165 : vector<16x64xf32>
    %c0_167 = arith.constant 0 : index
    %c0_168 = arith.constant 0 : index
    %167 = vector.load %arg9[%c0_167, %c0_168] : memref<1x64xf32, #tpu.memory_space<vmem>>, vector<1x64xf32>
    %168 = vector.broadcast %167 : vector<1x64xf32> to vector<16x64xf32>
    %169 = arith.addf %166, %168 : vector<16x64xf32>
    %cst_169 = arith.constant 0.000000e+00 : f32
    %170 = vector.broadcast %cst_169 : f32 to vector<16x64xf32>
    %171 = arith.maximumf %169, %170 : vector<16x64xf32>
    %172 = vector.shape_cast %171 : vector<16x64xf32> to vector<2x8x64xf32>
    %cst_170 = arith.constant dense<0.000000e+00> : vector<2x64xf32>
    %173 = vector.multi_reduction <add>, %172, %cst_170 [1] : vector<2x8x64xf32> to vector<2x64xf32>
    %cst_171 = arith.constant 8.000000e+00 : f32
    %174 = vector.broadcast %cst_171 : f32 to vector<2x64xf32>
    %175 = arith.divf %173, %174 : vector<2x64xf32>
    %c0_172 = arith.constant 0 : index
    %c0_173 = arith.constant 0 : index
    %176 = vector.load %arg10[%c0_172, %c0_173] : memref<64x2xf32, #tpu.memory_space<vmem>>, vector<64x2xf32>
    %cst_174 = arith.constant dense<0.000000e+00> : vector<2x2xf32>
    %177 = tpu.matmul %175, %176, %cst_174 {dimension_numbers = #tpu.dot_dimension_numbers<[1], [0], [0], [1], [0, 0, 1, 1], [], []>} : vector<2x64xf32>, vector<64x2xf32>, vector<2x2xf32> -> vector<2x2xf32>
    %c0_175 = arith.constant 0 : index
    %c0_176 = arith.constant 0 : index
    %178 = vector.load %arg11[%c0_175, %c0_176] : memref<1x2xf32, #tpu.memory_space<vmem>>, vector<1x2xf32>
    %179 = vector.broadcast %178 : vector<1x2xf32> to vector<2x2xf32>
    %180 = arith.addf %177, %179 : vector<2x2xf32>
    %c0_177 = arith.constant 0 : index
    %c0_178 = arith.constant 0 : index
    %181 = vector.load %arg12[%c0_177, %c0_178] : memref<2x2xf32, #tpu.memory_space<vmem>>, vector<2x2xf32>
    tpu.vector_store %arg12[%c0_177, %c0_178], %180 {strides = array<i32>} : memref<2x2xf32, #tpu.memory_space<vmem>>, vector<2x2xf32>,
    return
  }
  func.func @transform_0(%arg0: i32) -> (i32, i32, i32) {
    %c0_i32 = arith.constant 0 : i32
    %c0_i32_0 = arith.constant 0 : i32
    %c0_i32_1 = arith.constant 0 : i32
    return %arg0, %c0_i32, %c0_i32_0 : i32, i32, i32
  }
  func.func @transform_1(%arg0: i32) -> (i32, i32, i32) {
    %c0_i32 = arith.constant 0 : i32
    %c0_i32_0 = arith.constant 0 : i32
    %c0_i32_1 = arith.constant 0 : i32
    %c0_i32_2 = arith.constant 0 : i32
    return %c0_i32, %c0_i32_0, %c0_i32_1 : i32, i32, i32
  }
  func.func @transform_2(%arg0: i32) -> (i32, i32) {
    %c0_i32 = arith.constant 0 : i32
    %c0_i32_0 = arith.constant 0 : i32
    %c0_i32_1 = arith.constant 0 : i32
    return %c0_i32, %c0_i32_0 : i32, i32
  }
  func.func @transform_3(%arg0: i32) -> (i32, i32, i32) {
    %c0_i32 = arith.constant 0 : i32
    %c0_i32_0 = arith.constant 0 : i32
    %c0_i32_1 = arith.constant 0 : i32
    %c0_i32_2 = arith.constant 0 : i32
    return %c0_i32, %c0_i32_0, %c0_i32_1 : i32, i32, i32
  }
  func.func @transform_4(%arg0: i32) -> (i32, i32) {
    %c0_i32 = arith.constant 0 : i32
    %c0_i32_0 = arith.constant 0 : i32
    %c0_i32_1 = arith.constant 0 : i32
    return %c0_i32, %c0_i32_0 : i32, i32
  }
  func.func @transform_5(%arg0: i32) -> (i32, i32, i32) {
    %c0_i32 = arith.constant 0 : i32
    %c0_i32_0 = arith.constant 0 : i32
    %c0_i32_1 = arith.constant 0 : i32
    %c0_i32_2 = arith.constant 0 : i32
    return %c0_i32, %c0_i32_0, %c0_i32_1 : i32, i32, i32
  }
  func.func @transform_6(%arg0: i32) -> (i32, i32) {
    %c0_i32 = arith.constant 0 : i32
    %c0_i32_0 = arith.constant 0 : i32
    %c0_i32_1 = arith.constant 0 : i32
    return %c0_i32, %c0_i32_0 : i32, i32
  }
  func.func @transform_7(%arg0: i32) -> (i32, i32, i32) {
    %c0_i32 = arith.constant 0 : i32
    %c0_i32_0 = arith.constant 0 : i32
    %c0_i32_1 = arith.constant 0 : i32
    %c0_i32_2 = arith.constant 0 : i32
    return %c0_i32, %c0_i32_0, %c0_i32_1 : i32, i32, i32
  }
  func.func @transform_8(%arg0: i32) -> (i32, i32) {
    %c0_i32 = arith.constant 0 : i32
    %c0_i32_0 = arith.constant 0 : i32
    %c0_i32_1 = arith.constant 0 : i32
    return %c0_i32, %c0_i32_0 : i32, i32
  }
  func.func @transform_9(%arg0: i32) -> (i32, i32) {
    %c0_i32 = arith.constant 0 : i32
    %c0_i32_0 = arith.constant 0 : i32
    %c0_i32_1 = arith.constant 0 : i32
    return %c0_i32, %c0_i32_0 : i32, i32
  }
  func.func @transform_10(%arg0: i32) -> (i32, i32) {
    %c0_i32 = arith.constant 0 : i32
    %c0_i32_0 = arith.constant 0 : i32
    %c0_i32_1 = arith.constant 0 : i32
    return %c0_i32, %c0_i32_0 : i32, i32
  }
  func.func @transform_11(%arg0: i32) -> (i32, i32) {
    %c0_i32 = arith.constant 0 : i32
    %c0_i32_0 = arith.constant 0 : i32
    return %arg0, %c0_i32 : i32, i32
  }
}

</mosaic_0001>

<bundles_post_ra>
// kernel: cnn_forward.1
= control target key start
LH: loop header
LB: loop body
LE: loop exit
PB: predicated region body
PF: predicated region fallthrough
CT: control target
= control target key end

     0   :  { %16 = vsyncpa [#allocation7], 0  ;;  %s2229_s0 = inlined_call_operand.vmem [shape: f32[2,16,2], index: 0, kind: input, shape index: {}]   ;;  %s2230_s1 = inlined_call_operand.hbm [shape: bf16[5,2,16], index: 1, kind: input, shape index: {}]   ;;  %s2231_s2 = inlined_call_operand.hbm [shape: f32[1,16], index: 2, kind: input, shape index: {}]   ;;  %s2232_s3 = inlined_call_operand.vmem [shape: bf16[3,16,32], index: 3, kind: input, shape index: {}]   ;;  %s2233_s4 = inlined_call_operand.hbm [shape: f32[1,32], index: 4, kind: input, shape index: {}]   ;;  %s2234_s5 = inlined_call_operand.hbm [shape: bf16[3,32,64], index: 5, kind: input, shape index: {}]   ;;  %s2235_s6 = inlined_call_operand.hbm [shape: f32[1,64], index: 6, kind: input, shape index: {}]   ;;  %s2236_s7 = inlined_call_operand.vmem [shape: bf16[3,64,64], index: 7, kind: input, shape index: {}]   ;;  %s2237_s8 = inlined_call_operand.hbm [shape: f32[1,64], index: 8, kind: input, shape index: {}]   ;;  %s2238_s9 = inlined_call_operand.vmem [shape: f32[64,2], index: 9, kind: input, shape index: {}]   ;;  %s2239_s10 = inlined_call_operand.hbm [shape: f32[1,2], index: 10, kind: input, shape index: {}]   ;;  %s2240_s11 = inlined_call_operand.hbm [shape: f32[2,2], index: 11, kind: output, shape index: {}]  }
   0x1   :  { %17 = vsyncpa [#allocation10], 0 }
   0x2   :  { %18 = vsyncpa [#allocation13], 0 }
   0x3   :  { %19 = vsyncpa [#allocation16], 0 }
   0x4   :  { %20 = vsyncpa [#allocation8], 0  ;;  %s1916_s17 = smov [#allocation9]   ;;  %s1917_s19 = smov [#allocation12]  }
   0x5   :  { %s41_s18 = sshll.u32 %s1916_s17, 4  ;;  %s62_s20 = sshll.u32 %s1917_s19, 4  ;;  %s42_s18 = int_to_ptr.vmem [resolvable:$true] %s41_s18  ;;  %s63_s20 = int_to_ptr.vmem [resolvable:$true] %s62_s20 }
   0x6   :  { %s1754_s21 = scalar_lea.vmem %s42_s18, 16  ;;  %s1758_s22 = scalar_lea.vmem %s42_s18, 32 }
   0x7   :  { %p1755_p0 = scmp.ne.s32.totalorder %s42_s18, %s1754_s21  ;;  %p1759_p1 = scmp.lt.s32.totalorder %s42_s18, %s42_s18 }
   0x8   :  { %p1760_p2 = scmp.lt.s32.totalorder %s1758_s22, %s1754_s21 }
   0xa   :  { %p1761_p3 = por %p1760_p2, %p1759_p1 }
   0xc   :  { %p1762_p4 = pnand %p1761_p3, %p1755_p0 }
   0xe   :  { %1765 = shalt.err (!%p1762_p4)
}
   0xf   :  { %44 = dma.hbm_to_vmem [thread:$0]  %s2231_s2, 16, %s42_s18, [#allocation10]  }
  0x10   :  { %s1774_s25 = scalar_lea.vmem %s63_s20, 768  ;;  %p1779_p6 = scmp.lt.s32.totalorder %s63_s20, %s63_s20 }
  0x11   :  { %p1775_p5 = scmp.ne.s32.totalorder %s63_s20, %s1774_s25  ;;  %p1780_p7 = scmp.lt.s32.totalorder %s1774_s25, %s1774_s25 }
  0x13   :  { %p1781_p8 = por %p1780_p7, %p1779_p6 }
  0x15   :  { %p1782_p9 = pnand %p1781_p8, %p1775_p5 }
  0x17   :  { %1785 = shalt.err (!%p1782_p9)
}
  0x18   :  { %s1918_s26 = smov 64   ;;  %s1919_s27 = smov 4  }
  0x19   :  { %68 = dma.hbm_to_vmem [thread:$0]  %s2234_s5, 768, %s63_s20, [#allocation13], %s1918_s26, %s1918_s26, %s1919_s27  }
  0x1a   :  { %s1920_s30 = smov [#allocation15]   ;;  %s1921_s13 = smov [#allocation6]  }
  0x1b   :  { %s87_s12 = sshll.u32 %s1920_s30, 4  ;;  %s28_s14 = sshll.u32 %s1921_s13, 4  ;;  %s88_s12 = int_to_ptr.vmem [resolvable:$true] %s87_s12  ;;  %s29_s14 = int_to_ptr.vmem [resolvable:$true] %s28_s14 }
  0x1c   :  { %s1794_s2 = scalar_lea.vmem %s88_s12, 16  ;;  %s1798_s15 = scalar_lea.vmem %s88_s12, 32 }
  0x1d   :  { %p1795_p10 = scmp.ne.s32.totalorder %s88_s12, %s1794_s2  ;;  %p1799_p11 = scmp.lt.s32.totalorder %s88_s12, %s88_s12 }
  0x1e   :  { %p1800_p12 = scmp.lt.s32.totalorder %s1798_s15, %s1794_s2 }
  0x20   :  { %p1801_p13 = por %p1800_p12, %p1799_p11 }
  0x22   :  { %p1802_p0 = pnand %p1801_p13, %p1795_p10 }
  0x24   :  { %1805 = shalt.err (!%p1802_p0)
}
  0x25   :  { %90 = dma.hbm_to_vmem [thread:$0]  %s2237_s8, 16, %s88_s12, [#allocation16]  }
  0x26   :  { %s1814_s18 = scalar_lea.vmem %s29_s14, 80  ;;  %s1818_s5 = scalar_lea.vmem %s29_s14, 96 }
  0x27   :  { %p1815_p1 = scmp.ne.s32.totalorder %s29_s14, %s1814_s18  ;;  %p1819_p2 = scmp.lt.s32.totalorder %s29_s14, %s29_s14 }
  0x28   :  { %p1820_p3 = scmp.lt.s32.totalorder %s1818_s5, %s1814_s18 }
  0x2a   :  { %p1821_p4 = por %p1820_p3, %p1819_p2 }
  0x2c   :  { %p1822_p5 = pnand %p1821_p4, %p1815_p1 }
  0x2e   :  { %1825 = shalt.err (!%p1822_p5)
}
  0x2f   :  { %s1922_s19 = smov 16   ;;  %s1923_s20 = smov 1  }
  0x30   :  { %34 = dma.hbm_to_vmem [thread:$0]  %s2230_s1, 80, %s29_s14, [#allocation7], %s1922_s19, %s1922_s19, %s1923_s20  }
  0x31   :  { %s1924_s23 = smov [#allocation11]   ;;  %s1925_s25 = smov [#allocation14]  }
  0x32   :  { %s53_s24 = sshll.u32 %s1924_s23, 4  ;;  %s75_s26 = sshll.u32 %s1925_s25, 4  ;;  %s54_s24 = int_to_ptr.vmem [resolvable:$true] %s53_s24  ;;  %s76_s26 = int_to_ptr.vmem [resolvable:$true] %s75_s26 }
  0x33   :  { %s1834_s8 = scalar_lea.vmem %s54_s24, 16  ;;  %s1838_s27 = scalar_lea.vmem %s54_s24, 32 }
  0x34   :  { %p1835_p6 = scmp.ne.s32.totalorder %s54_s24, %s1834_s8  ;;  %p1839_p7 = scmp.lt.s32.totalorder %s54_s24, %s54_s24 }
  0x35   :  { %p1840_p8 = scmp.lt.s32.totalorder %s1838_s27, %s1834_s8 }
  0x37   :  { %p1841_p9 = por %p1840_p8, %p1839_p7 }
  0x39   :  { %p1842_p10 = pnand %p1841_p9, %p1835_p6 }
  0x3b   :  { %1845 = shalt.err (!%p1842_p10)
}
  0x3c   :  { %56 = dma.hbm_to_vmem [thread:$0]  %s2233_s4, 16, %s54_s24, [#allocation10]  }
  0x3d   :  { %s1854_s30 = scalar_lea.vmem %s76_s26, 16  ;;  %s1858_s1 = scalar_lea.vmem %s76_s26, 32 }
  0x3e   :  { %p1855_p11 = scmp.ne.s32.totalorder %s76_s26, %s1854_s30  ;;  %p1859_p12 = scmp.lt.s32.totalorder %s76_s26, %s76_s26 }
  0x3f   :  { %p1860_p13 = scmp.lt.s32.totalorder %s1858_s1, %s1854_s30 }
  0x41   :  { %p1861_p0 = por %p1860_p13, %p1859_p12 }
  0x43   :  { %p1862_p1 = pnand %p1861_p0, %p1855_p11 }
  0x45   :  { %1865 = shalt.err (!%p1862_p1)
}
  0x46   :  { %78 = dma.hbm_to_vmem [thread:$0]  %s2235_s6, 16, %s76_s26, [#allocation13]  }
  0x47   :  { %s1926_s14 = smov [#allocation17]  }
  0x48   :  { %s99_s2 = sshll.u32 %s1926_s14, 4  ;;  %s100_s2 = int_to_ptr.vmem [resolvable:$true] %s99_s2 }
  0x49   :  { %s1874_s15 = scalar_lea.vmem %s100_s2, 16  ;;  %s1878_s16 = scalar_lea.vmem %s100_s2, 32 }
  0x4a   :  { %p1875_p2 = scmp.ne.s32.totalorder %s100_s2, %s1874_s15  ;;  %p1879_p3 = scmp.lt.s32.totalorder %s100_s2, %s100_s2 }
  0x4b   :  { %p1880_p4 = scmp.lt.s32.totalorder %s1878_s16, %s1874_s15 }
  0x4d   :  { %p1881_p5 = por %p1880_p4, %p1879_p3 }
  0x4f   :  { %p1882_p6 = pnand %p1881_p5, %p1875_p2 }
  0x51   :  { %1885 = shalt.err (!%p1882_p6)
}
  0x52   :  { %102 = dma.hbm_to_vmem [thread:$0]  %s2239_s10, 16, %s100_s2, [#allocation16]  }
  0x53   :  { %1906 = dma.done.wait [#allocation7], 80  }
  0x54   :  { %1907 = vsyncadd [#allocation7], 4294967216 }
  0x55   :  { %1908 = dma.done.wait [#allocation10], 32  }
  0x56   :  { %1909 = vsyncadd [#allocation10], 4294967264 }
  0x57   :  { %1910 = dma.done.wait [#allocation13], 784  }
  0x58   :  { %1911 = vsyncadd [#allocation13], 4294966512 }
  0x59   :  { %1912 = dma.done.wait [#allocation16], 32  }
  0x5a   :  { %1913 = vsyncadd [#allocation16], 4294967264  ;;  %vm129_vm0 = vcmask 9216   ;;  %v1927_v0 = vmov 0.0   ;;  %vm160_vm1 = vcmask 1040384   ;;  %vm134_vm2 = vcmask 15360  }
  0x5b   :  { %130 = vst.msk [vmem:[#allocation2 + $0x6] sm:$0x3] %vm129_vm0, %v1927_v0  ;;  %131 = vst.msk [vmem:[#allocation2 + $0x26] sm:$0x3] %vm129_vm0, %v1927_v0  ;;  %v153_v1 = vld [vmem:[#allocation6 + $0x1] sm:$0x1] }
  0x5c   :  { %132 = vst.msk [vmem:[#allocation2 + $0x18] sm:$0x3] %vm129_vm0, %v1927_v0  ;;  %133 = vst.msk [vmem:[#allocation2 + $0x38] sm:$0x3] %vm129_vm0, %v1927_v0  ;;  %v145_v2 = vld [vmem:[#allocation6] sm:$0x1]  ;;  %1706 = vmatprep.subr.msk.bf16.mxu0 %vm160_vm1, %v153_v1 }
  0x5d   :  { %v125_v3 = vld [vmem:[%s2229_s0] sm:$0xff]  ;;  %v162_v4 = vsel %vm160_vm1, %v153_v1, 0  ;;  %1707 = vmatprep.subr.msk.bf16.mxu1 %vm160_vm1, %v145_v2  ;;  %v220_v5 = vsel %vm160_vm1, %v145_v2, 0  ;;  %v126_v6 = vld [vmem:[%s2229_s0 + $0x8] sm:$0xff]  ;;  %v127_v8 = vld [vmem:[%s2229_s0 + $0x10] sm:$0xff]  ;;  %vm496_vm3 = vcmask 122880  }
  0x5e   :  { %135 = vst.msk [vmem:[#allocation2 + $0x8] sm:$0xff] %vm134_vm2, %v125_v3  ;;  %v278_v7 = vld [vmem:[#allocation6 + $0x2] sm:$0x1]  ;;  %1562 = vmatpush3.bf16.msra.mxu0 %v162_v4  ;;  %1568 = vmatpush3.bf16.msra.mxu1 %v220_v5  ;;  %136 = vst.msk [vmem:[#allocation2 + $0x10] sm:$0xff] %vm134_vm2, %v126_v6  ;;  %v128_v9 = vld [vmem:[%s2229_s0 + $0x18] sm:$0xff]  ;;  %vm1928_vm4 = vmmov 0  }
  0x5f   :  { %137 = vst.msk [vmem:[#allocation2 + $0x28] sm:$0xff] %vm134_vm2, %v127_v8  ;;  %v348_v10 = vld [vmem:[#allocation6 + $0x3] sm:$0x1]  ;;  %1708 = vmatprep.subr.msk.bf16.mxu0 %vm160_vm1, %v278_v7  ;;  %138 = vst.msk [vmem:[#allocation2 + $0x30] sm:$0xff] %vm134_vm2, %v128_v9  ;;  %v418_v17 = vld [vmem:[#allocation6 + $0x4] sm:$0x1] }
  0x60   :  { %1709 = vmatprep.subr.msk.bf16.mxu1 %vm160_vm1, %v348_v10  ;;  %v286_v25 = vsel %vm160_vm1, %v278_v7, 0  ;;  %v356_v26 = vsel %vm160_vm1, %v348_v10, 0  ;;  %v426_v36 = vsel %vm160_vm1, %v418_v17, 0  ;;  %497 = vst.msk [vmem:[#allocation3 + $0x7] sm:$0x1] %vm496_vm3, %v1927_v0  ;;  %v2064_v45 = vld [vmem:[%s2232_s3 + $0x8] sm:$0xff]  }
  0x61   :  { %498 = vst.msk [vmem:[#allocation3 + $0x27] sm:$0x1] %vm496_vm3, %v1927_v0  ;;  %499 = vst.msk [vmem:[#allocation3 + $0x18] sm:$0x1] %vm496_vm3, %v1927_v0  ;;  %v2069_v46 = vld [vmem:[%s2232_s3] sm:$0xff]   ;;  %vm501_vm5 = vcmask 130048  }
  0x62   :  { %500 = vst.msk [vmem:[#allocation3 + $0x38] sm:$0x1] %vm496_vm3, %v1927_v0  ;;  %v1442_v8 = vld [vmem:[#allocation9] ss:$0 sm:$0xff]  ;;  %vm833_vm6 = vcmask 253952   ;;  %vm838_vm7 = vcmask 261120  }
  0x63   :  { %834 = vst.msk [vmem:[#allocation4 + $0x7] sm:$0x1] %vm833_vm6, %v1927_v0  ;;  %835 = vst.msk [vmem:[#allocation4 + $0x1f] sm:$0x1] %vm833_vm6, %v1927_v0  ;;  %vm1045_vm8 = vcmask 516096   ;;  %vm1050_vm9 = vcmask 523264  }
  0x64   :  { %836 = vst.msk [vmem:[#allocation4 + $0x10] sm:$0x1] %vm833_vm6, %v1927_v0  ;;  %837 = vst.msk [vmem:[#allocation4 + $0x28] sm:$0x1] %vm833_vm6, %v1927_v0  ;;  %vm1339_vm10 = vcmask 1041409  }
  0x65   :  { %v146_v11 = vld [vmem:[#allocation2 + $0x7] sm:$0xff]  ;;  %v147_v14 = vld [vmem:[#allocation2 + $0xf] sm:$0xff]  ;;  %1046 = vst.msk [vmem:[#allocation5 + $0x7] sm:$0x1] %vm1045_vm8, %v1927_v0  ;;  %1047 = vst.msk [vmem:[#allocation5 + $0x1f] sm:$0x1] %vm1045_vm8, %v1927_v0 }
  0x66   :  { %v139_v12 = vld [vmem:[#allocation2 + $0x6] sm:$0xff]  ;;  %v140_v15 = vld [vmem:[#allocation2 + $0xe] sm:$0xff]  ;;  %v150_v18 = vpack.c.bf16 %v147_v14, %v146_v11  ;;  %1048 = vst.msk [vmem:[#allocation5 + $0x10] sm:$0x1] %vm1045_vm8, %v1927_v0  ;;  %1049 = vst.msk [vmem:[#allocation5 + $0x28] sm:$0x1] %vm1045_vm8, %v1927_v0 }
  0x67   :  { %v271_v13 = vld [vmem:[#allocation2 + $0x8] sm:$0xff]  ;;  %v143_v19 = vpack.c.bf16 %v140_v15, %v139_v12  ;;  %v272_v27 = vld [vmem:[#allocation2 + $0x10] sm:$0xff] }
  0x68   :  { %v148_v16 = vld [vmem:[#allocation2 + $0x27] sm:$0xff]  ;;  %v149_v20 = vld [vmem:[#allocation2 + $0x2f] sm:$0xff]  ;;  %1563 = vmatprep.mubr.msk.bf16.mxu0 %vm134_vm2, %v150_v18  ;;  %v275_v30 = vpack.c.bf16 %v272_v27, %v271_v13 }
  0x69   :  { %v141_v21 = vld [vmem:[#allocation2 + $0x26] sm:$0xff]  ;;  %v142_v22 = vld [vmem:[#allocation2 + $0x2e] sm:$0xff]  ;;  %v151_v23 = vpack.c.bf16 %v149_v20, %v148_v16  ;;  %1569 = vmatprep.mubr.msk.bf16.mxu1 %vm134_vm2, %v143_v19 }
  0x6a   :  { %v144_v24 = vpack.c.bf16 %v142_v22, %v141_v21  ;;  %v341_v28 = vld [vmem:[#allocation2 + $0x9] sm:$0xff]  ;;  %v342_v29 = vld [vmem:[#allocation2 + $0x11] sm:$0xff] }
  0x6b   :  { %v345_v31 = vpack.c.bf16 %v342_v29, %v341_v28  ;;  %v273_v32 = vld [vmem:[#allocation2 + $0x28] sm:$0xff]  ;;  %1564 = vmatmul.mubr.msk.bf16.vlgmr.msra.gmra.mxu0 %vm134_vm2, %v151_v23  ;;  %v274_v33 = vld [vmem:[#allocation2 + $0x30] sm:$0xff] }
  0x6c   :  { %1570 = vmatmul.mubr.msk.bf16.vlgmr.msra.gmra.mxu1 %vm134_vm2, %v144_v24  ;;  %v343_v34 = vld [vmem:[#allocation2 + $0x29] sm:$0xff]  ;;  %v344_v35 = vld [vmem:[#allocation2 + $0x31] sm:$0xff]  ;;  %1574 = vmatpush3.bf16.msra.mxu0 %v286_v25  ;;  %v276_v39 = vpack.c.bf16 %v274_v33, %v273_v32 }
  0x6d   :  { %1580 = vmatpush3.bf16.msra.mxu1 %v356_v26  ;;  %v411_v37 = vld [vmem:[#allocation2 + $0xa] sm:$0xff]  ;;  %v412_v38 = vld [vmem:[#allocation2 + $0x12] sm:$0xff]  ;;  %1575 = vmatprep.mubr.msk.bf16.mxu0 %vm134_vm2, %v275_v30  ;;  %v346_v40 = vpack.c.bf16 %v344_v35, %v343_v34 }
  0x6e   :  { %1581 = vmatprep.mubr.msk.bf16.mxu1 %vm134_vm2, %v345_v31  ;;  %1710 = vmatprep.subr.msk.bf16.mxu0 %vm160_vm1, %v418_v17  ;;  %v415_v41 = vpack.c.bf16 %v412_v38, %v411_v37  ;;  %v413_v42 = vld [vmem:[#allocation2 + $0x2a] sm:$0xff]  ;;  %v414_v43 = vld [vmem:[#allocation2 + $0x32] sm:$0xff] }
  0x6f   :  { %1591 = vmatprep.subr.bf16.mxu1 %v1927_v0  ;;  %v416_v44 = vpack.c.bf16 %v414_v43, %v413_v42  ;;  %v1727_v30 = vld [vmem:[%s2232_s3 + $0x10] sm:$0xff]   ;;  %v1728_v42 = vld [vmem:[#allocation12 + $0x18] sm:$0xff]  }
  0x70   :  { %v1729_v43 = vld [vmem:[#allocation12 + $0x8] sm:$0xff]  }
  0x73   :  { %1576 = vmatmul.mubr.msk.bf16.vlgmr.msra.gmra.mxu0 %vm134_vm2, %v276_v39 }
  0x74   :  { %1582 = vmatmul.mubr.msk.bf16.vlgmr.msra.gmra.mxu1 %vm134_vm2, %v346_v40  ;;  %1586 = vmatpush3.bf16.msra.mxu0 %v426_v36 }
  0x75   :  { %1587 = vmatprep.mubr.msk.bf16.mxu0 %vm134_vm2, %v415_v41  ;;  %1597 = vmatprep.subr.bf16.mxu0 %v1927_v0 }
  0x76   :  { %1593 = vmatprep.mubr.msk.bf16.mxu1 %vm1928_vm4, %v1927_v0  ;;  %1592 = vmatpush3.bf16.msra.mxu1 %v2064_v45 }
  0x77   :  { %1603 = vmatprep.subr.bf16.mxu1 %v1927_v0 }
  0x7b   :  { %1588 = vmatmul.mubr.msk.bf16.vlgmr.msra.gmra.mxu0 %vm134_vm2, %v416_v44  ;;  %v1730_v44 = vld [vmem:[#allocation12 + $0x10] sm:$0xff]  }
  0x7c   :  { %1599 = vmatprep.mubr.msk.bf16.mxu0 %vm1928_vm4, %v1927_v0  ;;  %1598 = vmatpush3.bf16.msra.mxu0 %v2069_v46 }
  0x7d   :  { %1609 = vmatprep.subr.bf16.mxu0 %v1927_v0 }
 0x12b   :  { %v1565_v47 = vpop.f32.mrf.mxu0 }
 0x12c   :  { %v1571_v48 = vpop.f32.mrf.mxu1 }
 0x12d   :  { %v198_v49 = vpop.f32.mrf.mxu0  ;;  %v265_v57 = vadd.f32 %v1571_v48, %v1565_v47 }
 0x12e   :  { %v256_v50 = vpop.f32.mrf.mxu1 }
 0x12f   :  { %v1566_v51 = vpop.f32.mrf.mxu0  ;;  %v257_v59 = vadd.f32 %v256_v50, %v198_v49 }
 0x130   :  { %v1572_v52 = vpop.f32.mrf.mxu1 }
 0x131   :  { %v201_v53 = vpop.f32.mrf.mxu0  ;;  %v268_v63 = vadd.f32 %v1572_v52, %v1566_v51 }
 0x132   :  { %v259_v54 = vpop.f32.mrf.mxu1 }
 0x133   :  { %v1577_v55 = vpop.f32.mrf.mxu0  ;;  %v260_v3 = vadd.f32 %v259_v54, %v201_v53 }
 0x134   :  { %v1583_v56 = vpop.f32.mrf.mxu1  ;;  %v339_v60 = vadd.f32 %v1577_v55, %v265_v57 }
 0x135   :  { %v322_v58 = vpop.f32.mrf.mxu0 }
 0x136   :  { %v392_v61 = vpop.f32.mrf.mxu1  ;;  %v337_v1 = vadd.f32 %v322_v58, %v257_v59  ;;  %v409_v4 = vadd.f32 %v1583_v56, %v339_v60 }
 0x137   :  { %v1578_v62 = vpop.f32.mrf.mxu0 }
 0x138   :  { %v340_v5 = vadd.f32 %v1578_v62, %v268_v63  ;;  %v1584_v6 = vpop.f32.mrf.mxu1  ;;  %v407_v9 = vadd.f32 %v392_v61, %v337_v1  ;;  %v1453_v1 = vld [vmem:[#allocation11] ss:$0 sm:$0xff] }
 0x139   :  { %v325_v2 = vpop.f32.mrf.mxu0 }
 0x13a   :  { %v338_v10 = vadd.f32 %v325_v2, %v260_v3  ;;  %v410_v13 = vadd.f32 %v1584_v6, %v340_v5  ;;  %v395_v16 = vpop.f32.mrf.mxu1 }
 0x13b   :  { %v1589_v7 = vpop.f32.mrf.mxu0 }
 0x13c   :  { %v479_v11 = vadd.f32 %v1589_v7, %v409_v4  ;;  %v408_v18 = vadd.f32 %v395_v16, %v338_v10 }
 0x13d   :  { %v462_v12 = vpop.f32.mrf.mxu0 }
 0x13e   :  { %v490_v14 = vadd.f32 %v1442_v8, %v479_v11  ;;  %v477_v15 = vadd.f32 %v462_v12, %v407_v9 }
 0x13f   :  { %v1590_v17 = vpop.f32.mrf.mxu0 }
 0x140   :  { %v494_v19 = vmax.f32 %v490_v14, 0.0  ;;  %v488_v20 = vadd.f32 %v1442_v8, %v477_v15  ;;  %v480_v21 = vadd.f32 %v1590_v17, %v410_v13 }
 0x141   :  { %v465_v22 = vpop.f32.mrf.mxu0 }
 0x142   :  { %504 = vst.msk [vmem:[#allocation3 + $0x28] sm:$0xff] %vm501_vm5, %v494_v19  ;;  %v492_v23 = vmax.f32 %v488_v20, 0.0  ;;  %v491_v24 = vadd.f32 %v1442_v8, %v480_v21  ;;  %v478_v25 = vadd.f32 %v465_v22, %v408_v18 }
 0x144   :  { %502 = vst.msk [vmem:[#allocation3 + $0x8] sm:$0xff] %vm501_vm5, %v492_v23  ;;  %v495_v26 = vmax.f32 %v491_v24, 0.0  ;;  %v489_v27 = vadd.f32 %v1442_v8, %v478_v25 }
 0x146   :  { %505 = vst.msk [vmem:[#allocation3 + $0x30] sm:$0xff] %vm501_vm5, %v495_v26  ;;  %v493_v28 = vmax.f32 %v489_v27, 0.0 }
 0x148   :  { %503 = vst.msk [vmem:[#allocation3 + $0x10] sm:$0xff] %vm501_vm5, %v493_v28 }
 0x14d   :  { %v516_v29 = vld [vmem:[#allocation3 + $0x28] ss:$2 sm:$0xff]  ;;  %v509_v33 = vld [vmem:[#allocation3 + $0x27] ss:$2 sm:$0xff] }
 0x14e   :  { %v624_v37 = vld [vmem:[#allocation3 + $0x29] ss:$2 sm:$0xff]  ;;  %v777_v40 = vld [vmem:[#allocation3 + $0x2a] ss:$2 sm:$0xff] }
 0x14f   :  { %v514_v31 = vld [vmem:[#allocation3 + $0x8] ss:$2 sm:$0xff]  ;;  %v507_v32 = vld [vmem:[#allocation3 + $0x7] ss:$2 sm:$0xff] }
 0x150   :  { %v517_v34 = vpack.c.bf16 %v516_v29, %v514_v31  ;;  %v510_v35 = vpack.c.bf16 %v509_v33, %v507_v32  ;;  %v622_v36 = vld [vmem:[#allocation3 + $0x9] ss:$2 sm:$0xff]  ;;  %v775_v39 = vld [vmem:[#allocation3 + $0xa] ss:$2 sm:$0xff] }
 0x151   :  { %v625_v38 = vpack.c.bf16 %v624_v37, %v622_v36  ;;  %v778_v41 = vpack.c.bf16 %v777_v40, %v775_v39  ;;  %v1732_v29 = vld [vmem:[#allocation12 + $0x28] sm:$0xff]  }
 0x152   :  { %1594 = vmatmul.mubr.msk.bf16.vlgmr.msra.gmra.mxu1 %vm501_vm5, %v517_v34  ;;  %1600 = vmatmul.mubr.msk.bf16.vlgmr.msra.gmra.mxu0 %vm501_vm5, %v510_v35  ;;  %v1733_v35 = vld [vmem:[#allocation12 + $0x20] sm:$0xff]   ;;  %v1734_v39 = vld [vmem:[%s2236_s7 + $0x38] sm:$0xff]  }
 0x153   :  { %1604 = vmatpush3.bf16.msra.mxu1 %v1727_v30  ;;  %1610 = vmatpush3.bf16.msra.mxu0 %v2064_v45  ;;  %v1731_v45 = vld [vmem:[#allocation12] sm:$0xff]   ;;  %v1735_v40 = vld [vmem:[%s2236_s7 + $0x18] sm:$0xff]  }
 0x154   :  { %1605 = vmatprep.mubr.msk.bf16.mxu1 %vm1928_vm4, %v1927_v0  ;;  %1611 = vmatprep.mubr.msk.bf16.mxu0 %vm1928_vm4, %v1927_v0 }
 0x155   :  { %1615 = vmatprep.subr.bf16.mxu1 %v1927_v0  ;;  %1621 = vmatprep.subr.bf16.mxu0 %v1927_v0 }
 0x15a   :  { %1606 = vmatmul.mubr.msk.bf16.vlgmr.msra.gmra.mxu1 %vm501_vm5, %v625_v38  ;;  %1612 = vmatmul.mubr.msk.bf16.vlgmr.msra.gmra.mxu0 %vm501_vm5, %v625_v38 }
 0x15b   :  { %1616 = vmatpush3.bf16.msra.mxu1 %v2069_v46  ;;  %1622 = vmatpush3.bf16.msra.mxu0 %v1727_v30 }
 0x15c   :  { %1617 = vmatprep.mubr.msk.bf16.mxu1 %vm1928_vm4, %v1927_v0  ;;  %1623 = vmatprep.mubr.msk.bf16.mxu0 %vm1928_vm4, %v1927_v0 }
 0x15d   :  { %1627 = vmatprep.subr.bf16.mxu1 %v1927_v0  ;;  %1635 = vmatprep.subr.bf16.mxu0 %v1927_v0 }
 0x162   :  { %1618 = vmatmul.mubr.msk.bf16.vlgmr.msra.gmra.mxu1 %vm501_vm5, %v517_v34  ;;  %1624 = vmatmul.mubr.msk.bf16.vlgmr.msra.gmra.mxu0 %vm501_vm5, %v778_v41  ;;  %v1736_v41 = vld [vmem:[%s2236_s7 + $0x30] sm:$0xff]  }
 0x163   :  { %1631 = vmatprep.mubr.msk.bf16.mxu1 %vm1928_vm4, %v1927_v0  ;;  %1639 = vmatprep.mubr.msk.bf16.mxu0 %vm1928_vm4, %v1927_v0 }
 0x164   :  { %1628 = vmatpush3.bf16.msra.mxu1 %v1728_v42  ;;  %1636 = vmatpush3.bf16.msra.mxu0 %v1729_v43  ;;  %v1737_v42 = vld [vmem:[%s2236_s7 + $0x10] sm:$0xff]   ;;  %v1738_v43 = vld [vmem:[%s2236_s7 + $0x28] sm:$0xff]  }
 0x165   :  { %1629 = vmatprep.subr.bf16.mxu1 %v1927_v0  ;;  %1637 = vmatprep.subr.bf16.mxu0 %v1927_v0 }
 0x168   :  { %1630 = vmatpush3.bf16.msra.mxu1 %v1730_v44  ;;  %1638 = vmatpush3.bf16.msra.mxu0 %v1731_v45  ;;  %v1739_v44 = vld [vmem:[%s2236_s7 + $0x8] sm:$0xff]   ;;  %v1740_v45 = vld [vmem:[%s2236_s7 + $0x20] sm:$0xff]  }
 0x169   :  { %1643 = vmatprep.subr.bf16.mxu1 %v1927_v0  ;;  %1651 = vmatprep.subr.bf16.mxu0 %v1927_v0 }
 0x212   :  { %v564_v46 = vpop.f32.mrf.mxu1  ;;  %v614_v47 = vpop.f32.mrf.mxu0 }
 0x213   :  { %v615_v60 = vadd.f32 %v614_v47, %v564_v46  ;;  %v1741_v46 = vld [vmem:[%s2236_s7] sm:$0xff]  }
 0x214   :  { %v1595_v48 = vpop.f32.mrf.mxu1  ;;  %v1601_v49 = vpop.f32.mrf.mxu0 }
 0x216   :  { %v567_v50 = vpop.f32.mrf.mxu1  ;;  %v617_v51 = vpop.f32.mrf.mxu0 }
 0x217   :  { %v618_v4 = vadd.f32 %v617_v51, %v567_v50 }
 0x218   :  { %v1596_v52 = vpop.f32.mrf.mxu1  ;;  %v1602_v53 = vpop.f32.mrf.mxu0 }
 0x21a   :  { %v672_v54 = vpop.f32.mrf.mxu1  ;;  %v726_v55 = vpop.f32.mrf.mxu0 }
 0x21b   :  { %v679_v63 = vadd.f32 %v672_v54, %v615_v60 }
 0x21c   :  { %v1607_v56 = vpop.f32.mrf.mxu1  ;;  %v1613_v57 = vpop.f32.mrf.mxu0 }
 0x21d   :  { %v688_v8 = vadd.f32 %v1453_v1, %v679_v63  ;;  %v1466_v57 = vld [vmem:[#allocation14] ss:$0 sm:$0xff] }
 0x21e   :  { %v675_v58 = vpop.f32.mrf.mxu1  ;;  %v729_v59 = vpop.f32.mrf.mxu0 }
 0x21f   :  { %v680_v9 = vadd.f32 %v675_v58, %v618_v4  ;;  %v690_v17 = vmax.f32 %v688_v8, 0.0 }
 0x220   :  { %v1608_v61 = vpop.f32.mrf.mxu1  ;;  %v1614_v62 = vpop.f32.mrf.mxu0 }
 0x221   :  { %v689_v18 = vadd.f32 %v1453_v1, %v680_v9 }
 0x222   :  { %v767_v2 = vpop.f32.mrf.mxu1  ;;  %v816_v3 = vpop.f32.mrf.mxu0 }
 0x223   :  { %v768_v5 = vadd.f32 %v767_v2, %v726_v55  ;;  %v691_v23 = vmax.f32 %v689_v18, 0.0  ;;  %v1329_v18 = vld [vmem:[%s2238_s9 + $0x38] sm:$0xff] }
 0x224   :  { %v1619_v6 = vpop.f32.mrf.mxu1  ;;  %v1625_v7 = vpop.f32.mrf.mxu0 }
 0x225   :  { %v823_v10 = vadd.f32 %v816_v3, %v768_v5  ;;  %v1742_v6 = vld [vmem:[%s2236_s7 + $0x58] sm:$0xff]  }
 0x226   :  { %v770_v11 = vpop.f32.mrf.mxu1  ;;  %v819_v12 = vpop.f32.mrf.mxu0 }
 0x227   :  { %v825_v13 = vadd.f32 %v1453_v1, %v823_v10  ;;  %v771_v14 = vadd.f32 %v770_v11, %v729_v59 }
 0x228   :  { %v1620_v15 = vpop.f32.mrf.mxu1  ;;  %v1626_v16 = vpop.f32.mrf.mxu0 }
 0x229   :  { %v827_v19 = vmax.f32 %v825_v13, 0.0  ;;  %v824_v20 = vadd.f32 %v819_v12, %v771_v14  ;;  %v1743_v12 = vld [vmem:[%s2236_s7 + $0x50] sm:$0xff]   ;;  %v1744_v13 = vld [vmem:[%s2236_s7 + $0x48] sm:$0xff]   ;;  %v1745_v14 = vld [vmem:[%s2236_s7 + $0x40] sm:$0xff]  }
 0x22b   :  { %v829_v21 = vadd.f32 %v827_v19, %v690_v17  ;;  %v826_v22 = vadd.f32 %v1453_v1, %v824_v20  ;;  %v1328_v19 = vld [vmem:[%s2238_s9 + $0x30] sm:$0xff]  ;;  %v1327_v20 = vld [vmem:[%s2238_s9 + $0x28] sm:$0xff] }
 0x22d   :  { %v831_v24 = vmul.f32 0.5, %v829_v21  ;;  %v828_v25 = vmax.f32 %v826_v22, 0.0  ;;  %v1326_v21 = vld [vmem:[%s2238_s9 + $0x20] sm:$0xff]  ;;  %v1325_v22 = vld [vmem:[%s2238_s9 + $0x18] sm:$0xff] }
 0x22f   :  { %v830_v26 = vadd.f32 %v828_v25, %v691_v23  ;;  %839 = vst.msk [vmem:[#allocation4 + $0x8] sm:$0xff] %vm838_vm7, %v831_v24  ;;  %v1324_v23 = vld [vmem:[%s2238_s9 + $0x10] sm:$0xff]  ;;  %v1323_v24 = vld [vmem:[%s2238_s9 + $0x8] sm:$0xff]  ;;  %v1322_v25 = vld [vmem:[%s2238_s9] sm:$0xff]  ;;  %s1929_s9 = smov [#allocation18]  }
 0x230   :  { %s1420_s16 = sshll.u32 %s1929_s9, 4  ;;  %s1421_s16 = int_to_ptr.vmem [resolvable:$true] %s1420_s16 }
 0x231   :  { %v832_v27 = vmul.f32 0.5, %v830_v26  ;;  %s1886_s4 = scalar_lea.vmem %s1421_s16, 32  ;;  %p1891_p8 = scmp.lt.s32.totalorder %s1421_s16, %s1421_s16 }
 0x232   :  { %p1887_p7 = scmp.ne.s32.totalorder %s1421_s16, %s1886_s4  ;;  %p1892_p9 = scmp.lt.s32.totalorder %s1886_s4, %s1886_s4 }
 0x233   :  { %840 = vst.msk [vmem:[#allocation4 + $0x20] sm:$0xff] %vm838_vm7, %v832_v27 }
 0x234   :  { %p1893_p10 = por %p1892_p9, %p1891_p8 }
 0x236   :  { %v848_v28 = vld [vmem:[#allocation4 + $0x8] sm:$0xff]  ;;  %p1894_p11 = pnand %p1893_p10, %p1887_p7 }
 0x237   :  { %v841_v31 = vld [vmem:[#allocation4 + $0x7] sm:$0xff] }
 0x238   :  { %v968_v37 = vld [vmem:[#allocation4 + $0x9] sm:$0xff] }
 0x23a   :  { %v849_v30 = vld [vmem:[#allocation4 + $0x20] sm:$0xff] }
 0x23b   :  { %v842_v32 = vld [vmem:[#allocation4 + $0x1f] sm:$0xff]  ;;  %v850_v33 = vpack.c.bf16 %v849_v30, %v848_v28 }
 0x23c   :  { %v843_v34 = vpack.c.bf16 %v842_v32, %v841_v31  ;;  %v969_v36 = vld [vmem:[#allocation4 + $0x21] sm:$0xff] }
 0x23d   :  { %1632 = vmatmul.mubr.msk.bf16.vlgmr.msra.gmra.mxu1 %vm838_vm7, %v850_v33  ;;  %v970_v38 = vpack.c.bf16 %v969_v36, %v968_v37  ;;  %v1498_v36 = vld [vmem:[#allocation15] ss:$0 sm:$0xff] }
 0x23e   :  { %1640 = vmatmul.mubr.msk.bf16.vlgmr.msra.gmra.mxu0 %vm838_vm7, %v843_v34  ;;  %1644 = vmatpush3.bf16.msra.mxu1 %v1732_v29 }
 0x23f   :  { %1647 = vmatprep.mubr.msk.bf16.mxu1 %vm1928_vm4, %v1927_v0  ;;  %1645 = vmatprep.subr.bf16.mxu1 %v1927_v0 }
 0x240   :  { %1659 = vmatprep.mubr.msk.bf16.mxu0 %vm1928_vm4, %v1927_v0  ;;  %1652 = vmatpush3.bf16.msra.mxu0 %v1734_v39 }
 0x241   :  { %1653 = vmatprep.subr.bf16.mxu0 %v1927_v0 }
 0x242   :  { %1646 = vmatpush3.bf16.msra.mxu1 %v1733_v35 }
 0x243   :  { %1663 = vmatprep.subr.bf16.mxu1 %v1927_v0 }
 0x244   :  { %1654 = vmatpush3.bf16.msra.mxu0 %v1736_v41 }
 0x245   :  { %1648 = vmatmul.mubr.msk.bf16.vlgmr.msra.gmra.mxu1 %vm838_vm7, %v970_v38  ;;  %1655 = vmatprep.subr.bf16.mxu0 %v1927_v0 }
 0x246   :  { %1671 = vmatprep.mubr.msk.bf16.mxu1 %vm1928_vm4, %v1927_v0  ;;  %1664 = vmatpush3.bf16.msra.mxu1 %v1735_v40 }
 0x247   :  { %1665 = vmatprep.subr.bf16.mxu1 %v1927_v0 }
 0x248   :  { %1656 = vmatpush3.bf16.msra.mxu0 %v1738_v43 }
 0x249   :  { %1657 = vmatprep.subr.bf16.mxu0 %v1927_v0 }
 0x24a   :  { %1666 = vmatpush3.bf16.msra.mxu1 %v1737_v42 }
 0x24b   :  { %1667 = vmatprep.subr.bf16.mxu1 %v1927_v0 }
 0x24c   :  { %1658 = vmatpush3.bf16.msra.mxu0 %v1740_v45 }
 0x24d   :  { %1675 = vmatprep.subr.bf16.mxu0 %v1927_v0 }
 0x24e   :  { %1668 = vmatpush3.bf16.msra.mxu1 %v1739_v44 }
 0x24f   :  { %1669 = vmatprep.subr.bf16.mxu1 %v1927_v0 }
 0x252   :  { %1670 = vmatpush3.bf16.msra.mxu1 %v1741_v46 }
 0x253   :  { %1687 = vmatprep.subr.mxu1 %v1927_v0 }
 0x2fd   :  { %v905_v47 = vpop.f32.mrf.mxu1 }
 0x2fe   :  { %v961_v48 = vpop.f32.mrf.mxu0 }
 0x2ff   :  { %v1633_v49 = vpop.f32.mrf.mxu1  ;;  %v962_v55 = vadd.f32 %v961_v48, %v905_v47 }
 0x300   :  { %v1641_v50 = vpop.f32.mrf.mxu0 }
 0x301   :  { %v908_v51 = vpop.f32.mrf.mxu1 }
 0x302   :  { %v964_v52 = vpop.f32.mrf.mxu0 }
 0x303   :  { %v1634_v53 = vpop.f32.mrf.mxu1  ;;  %v965_v60 = vadd.f32 %v964_v52, %v908_v51 }
 0x304   :  { %v1642_v54 = vpop.f32.mrf.mxu0 }
 0x305   :  { %v1025_v56 = vpop.f32.mrf.mxu1 }
 0x306   :  { %v1032_v58 = vadd.f32 %v1025_v56, %v962_v55 }
 0x307   :  { %v1649_v59 = vpop.f32.mrf.mxu1 }
 0x308   :  { %v1041_v61 = vadd.f32 %v1466_v57, %v1032_v58 }
 0x309   :  { %v1028_v62 = vpop.f32.mrf.mxu1 }
 0x30a   :  { %v1043_v63 = vmax.f32 %v1041_v61, 0.0  ;;  %v1033_v1 = vadd.f32 %v1028_v62, %v965_v60 }
 0x30b   :  { %v1650_v2 = vpop.f32.mrf.mxu1 }
 0x30c   :  { %1051 = vst.msk [vmem:[#allocation5 + $0x8] sm:$0xff] %vm1050_vm9, %v1043_v63  ;;  %v1042_v3 = vadd.f32 %v1466_v57, %v1033_v1  ;;  %v1499_v63 = vld [vmem:[#allocation17] ss:$0 sm:$0xff] }
 0x30e   :  { %v1044_v4 = vmax.f32 %v1042_v3, 0.0 }
 0x310   :  { %1052 = vst.msk [vmem:[#allocation5 + $0x20] sm:$0xff] %vm1050_vm9, %v1044_v4 }
 0x313   :  { %v1064_v5 = vld [vmem:[#allocation5 + $0x8] sm:$0xff] }
 0x314   :  { %v1053_v8 = vld [vmem:[#allocation5 + $0x7] sm:$0xff] }
 0x315   :  { %v1212_v16 = vld [vmem:[#allocation5 + $0x9] sm:$0xff] }
 0x317   :  { %v1065_v7 = vld [vmem:[#allocation5 + $0x20] sm:$0xff] }
 0x318   :  { %v1054_v9 = vld [vmem:[#allocation5 + $0x1f] sm:$0xff]  ;;  %v1066_v10 = vpack.c.bf16 %v1065_v7, %v1064_v5 }
 0x319   :  { %v1055_v11 = vpack.c.bf16 %v1054_v9, %v1053_v8  ;;  %v1213_v15 = vld [vmem:[#allocation5 + $0x21] sm:$0xff] }
 0x31a   :  { %1660 = vmatmul.mubr.msk.bf16.vlgmr.msra.gmra.mxu0 %vm1050_vm9, %v1066_v10  ;;  %v1214_v17 = vpack.c.bf16 %v1213_v15, %v1212_v16 }
 0x31b   :  { %1672 = vmatmul.mubr.msk.bf16.vlgmr.msra.gmra.mxu1 %vm1050_vm9, %v1055_v11  ;;  %1676 = vmatpush3.bf16.msra.mxu0 %v1742_v6 }
 0x31c   :  { %1683 = vmatprep.mubr.msk.bf16.mxu0 %vm1928_vm4, %v1927_v0  ;;  %1677 = vmatprep.subr.bf16.mxu0 %v1927_v0 }
 0x31d   :  { %1703 = vmatprep.mubr.msk.f32.mxu1 %vm1928_vm4, %v1927_v0  ;;  %1688 = vmatpush3.msra.mxu1 %v1329_v18 }
 0x31e   :  { %1689 = vmatprep.subr.mxu1 %v1927_v0 }
 0x31f   :  { %1678 = vmatpush3.bf16.msra.mxu0 %v1743_v12  ;;  %1690 = vmatpush3.msra.mxu1 %v1328_v19 }
 0x320   :  { %1679 = vmatprep.subr.bf16.mxu0 %v1927_v0  ;;  %1691 = vmatprep.subr.mxu1 %v1927_v0 }
 0x321   :  { %1692 = vmatpush3.msra.mxu1 %v1327_v20 }
 0x322   :  { %1693 = vmatprep.subr.mxu1 %v1927_v0 }
 0x323   :  { %1680 = vmatpush3.bf16.msra.mxu0 %v1744_v13  ;;  %1694 = vmatpush3.msra.mxu1 %v1326_v21 }
 0x324   :  { %1681 = vmatprep.subr.bf16.mxu0 %v1927_v0  ;;  %1695 = vmatprep.subr.mxu1 %v1927_v0 }
 0x325   :  { %1696 = vmatpush3.msra.mxu1 %v1325_v22 }
 0x326   :  { %1697 = vmatprep.subr.mxu1 %v1927_v0 }
 0x327   :  { %1682 = vmatpush3.bf16.msra.mxu0 %v1745_v14  ;;  %1698 = vmatpush3.msra.mxu1 %v1324_v23 }
 0x328   :  { %1699 = vmatprep.subr.mxu1 %v1927_v0 }
 0x329   :  { %1700 = vmatpush3.msra.mxu1 %v1323_v24 }
 0x32a   :  { %1684 = vmatmul.mubr.msk.bf16.vlgmr.msra.gmra.mxu0 %vm1050_vm9, %v1214_v17  ;;  %1701 = vmatprep.subr.mxu1 %v1927_v0 }
 0x32b   :  { %1702 = vmatpush3.msra.mxu1 %v1322_v25 }
 0x3da   :  { %v1137_v26 = vpop.f32.mrf.mxu0 }
 0x3db   :  { %v1205_v27 = vpop.f32.mrf.mxu1 }
 0x3dc   :  { %v1661_v28 = vpop.f32.mrf.mxu0  ;;  %v1206_v34 = vadd.f32 %v1205_v27, %v1137_v26 }
 0x3dd   :  { %v1673_v29 = vpop.f32.mrf.mxu1 }
 0x3de   :  { %v1140_v30 = vpop.f32.mrf.mxu0 }
 0x3df   :  { %v1208_v31 = vpop.f32.mrf.mxu1 }
 0x3e0   :  { %v1662_v32 = vpop.f32.mrf.mxu0  ;;  %v1209_v39 = vadd.f32 %v1208_v31, %v1140_v30 }
 0x3e1   :  { %v1674_v33 = vpop.f32.mrf.mxu1 }
 0x3ea   :  { %v1285_v35 = vpop.f32.mrf.mxu0 }
 0x3eb   :  { %v1292_v37 = vadd.f32 %v1285_v35, %v1206_v34 }
 0x3ec   :  { %v1685_v38 = vpop.f32.mrf.mxu0 }
 0x3ed   :  { %v1301_v40 = vadd.f32 %v1498_v36, %v1292_v37 }
 0x3ee   :  { %v1288_v41 = vpop.f32.mrf.mxu0 }
 0x3ef   :  { %v1303_v42 = vmax.f32 %v1301_v40, 0.0  ;;  %v1293_v43 = vadd.f32 %v1288_v41, %v1209_v39 }
 0x3f0   :  { %v1686_v0 = vpop.f32.mrf.mxu0 }
 0x3f1   :  { %v1305_v44 = vsel %vm1050_vm9, %v1303_v42, 0.0  ;;  %v1302_v45 = vadd.f32 %v1498_v36, %v1293_v43 }
 0x3f2   :  { %v1306_v46 = vrot.slane %v1305_v44, 4 }
 0x3f3   :  { %v1304_v47 = vmax.f32 %v1302_v45, 0.0 }
 0x3f4   :  { %v1307_v48 = vadd.f32 %v1306_v46, %v1305_v44 }
 0x3f5   :  { %v1312_v49 = vsel %vm1050_vm9, %v1304_v47, 0.0 }
 0x3f6   :  { %v1308_v50 = vrot.slane %v1307_v48, 2  ;;  %v1313_v51 = vrot.slane %v1312_v49, 4 }
 0x3f8   :  { %v1309_v52 = vadd.f32 %v1308_v50, %v1307_v48  ;;  %v1314_v53 = vadd.f32 %v1313_v51, %v1312_v49 }
 0x3fa   :  { %v1310_v54 = vrot.slane %v1309_v52, 1  ;;  %v1315_v55 = vrot.slane %v1314_v53, 2 }
 0x3fc   :  { %v1316_v56 = vadd.f32 %v1315_v55, %v1314_v53  ;;  %v1311_v57 = vadd.f32 %v1310_v54, %v1309_v52 }
 0x3fe   :  { %v1317_v58 = vrot.slane %v1316_v56, 1  ;;  %v1320_v60 = vmul.f32 0.125, %v1311_v57 }
 0x400   :  { %v1318_v59 = vadd.f32 %v1317_v58, %v1316_v56 }
 0x402   :  { %v1321_v61 = vmul.f32 0.125, %v1318_v59 }
 0x404   :  { %v1340_v62 = vsel %vm1339_vm10, %v1321_v61, %v1320_v60 }
 0x405   :  { %1704 = vmatmul.mubr.msk.f32.vlgmr.msra.gmra.mxu1 %vm1050_vm9, %v1340_v62 }
 0x4c5   :  { %v1409_v1 = vpop.f32.mrf.mxu1 }
 0x4c6   :  { %v1410_v2 = vadd.f32 %v1499_v63, %v1409_v1 }
 0x4c7   :  { %v1705_v3 = vpop.f32.mrf.mxu1 }
 0x4c8   :  { %1413 = vst.msk [vmem:[#allocation18] sm:$0x3] %vm129_vm0, %v1410_v2 }
 0x4c9   :  { %1897 = shalt.err (!%p1894_p11)
}
 0x4ca   :  { %1423 = dma.vmem_to_hbm [thread:$0]  %s1421_s16, 32, %s2240_s11, [#allocation8]  }
 0x4cb   :  { %1914 = dma.done.wait [#allocation8], 32  }
 0x4cc   :  { %1915 = vsyncadd [#allocation8], 4294967264 }
 0x4cd   :  { %1427 = vsyncpa [#allocation7], 1 }
 0x4ce   :  { %1428 = vsyncpa [#allocation10], 1 }
 0x4cf   :  { %1429 = vsyncpa [#allocation13], 1 }
 0x4d0   :  { %1430 = vsyncpa [#allocation16], 1 }
 0x4d1   :  { %1431 = vsyncpa [#allocation8], 1 }

</bundles_post_ra>
